<compile_context>
chip_gen: v7x
topology: tpu7x:2x2x1
jax: 0.10.0
libtpu: 0.0.40
codegen_flags: <defaults>
</compile_context>

<pallas_src>
import functools

import jax
import jax.numpy as jnp
from jax.experimental import pallas as pl
from jax.experimental.pallas import tpu as pltpu


_ROW_TILE_DEFAULT = 256          # rows of x (or parent labels) per grid step (multiple of 8)
_COL_TILE_DEFAULT = 128          # labels (or child labels) per grid step (multiple of 128)
_MAX_BCAST_BYTES = 2 * 1024 * 1024   # cap each (rows, cols, hidden) f32 temporary (~VMEM budget)


# ----------------------------------------------------------------------------
# Kernels
# ----------------------------------------------------------------------------
def _boxe_point_kernel(x_ref, min_ref, delta_ref, o_ref):
    """Point-in-box scoring: x_ref (tm,H), min/delta (tl,H) -> o_ref (tm,tl)."""
    x = x_ref[...].astype(jnp.float32)              # (tm, H)
    mn = min_ref[...].astype(jnp.float32)           # (tl, H)
    dl = delta_ref[...].astype(jnp.float32)         # (tl, H)

    mx = mn + dl
    ctr = mn + 0.5 * dl
    dp1 = dl + 1.0
    inv_in = 1.0 / (dp1 + 1e-10)                    # hoisted off the 3-D broadcast
    off_out = 0.5 * dl * (dl - 1.0 / (dl + 1e-10))

    x3 = x[:, None, :]                              # (tm, 1, H)
    l1 = jnp.abs(x3 - ctr[None, :, :])              # (tm, tl, H)
    inside = jnp.logical_and(mn[None, :, :] <= x3, x3 <= mx[None, :, :])
    per_dim = jnp.where(
        inside,
        l1 * inv_in[None, :, :],
        l1 * dp1[None, :, :] - off_out[None, :, :],
    )
    dist = jnp.sqrt(jnp.sum(per_dim * per_dim, axis=-1))   # (tm, tl)
    o_ref[...] = (-dist).astype(o_ref.dtype)


def _boxe_containment_kernel(minp_ref, deltap_ref, minc_ref, deltac_ref, o_ref):
    """Label-label containment: faithful to the torch broadcasting (delta_parent
    is indexed by the *child* axis in max_coordinate_parent)."""
    mp = minp_ref[...].astype(jnp.float32)          # (tp, H)  parent mins
    dpj = deltap_ref[...].astype(jnp.float32)       # (tc, H)  parent deltas (child-indexed)
    mc = minc_ref[...].astype(jnp.float32)          # (tc, H)  child mins
    dc = deltac_ref[...].astype(jnp.float32)        # (tc, H)  child deltas

    mp3 = mp[:, None, :]                            # (tp, 1, H)
    mc3 = mc[None, :, :]                            # (1, tc, H)
    max_p = mp3 + dpj[None, :, :]                   # (tp, tc, H)
    max_c = (mc + dc)[None, :, :]                   # (1, tc, H)

    min_v = jnp.where(mp3 <= mc3, 0.0, jnp.abs(mp3 - mc3))
    max_v = jnp.where(max_p >= max_c, 0.0, jnp.abs(max_p - max_c))
    v = min_v + max_v
    dist = jnp.sqrt(jnp.sum(v * v, axis=-1))        # (tp, tc)
    o_ref[...] = (-dist).astype(o_ref.dtype)


# ----------------------------------------------------------------------------
# Wrappers
# ----------------------------------------------------------------------------
def _split_box(t):
    """convert_to_box_parameters: split last dim into (min, softplus(delta))."""
    two_h = t.shape[-1]
    if two_h % 2 != 0:
        raise ValueError(f"The last dimension should be even but is {two_h}")
    h = two_h // 2
    return t[..., :h], jax.nn.softplus(t[..., h:])


def _col_tile(full, default=_COL_TILE_DEFAULT):
    # Output last dim: either the full label count or a multiple of 128.
    return full if full <= default else default


def _row_tile(full, hidden, col_tile, default=_ROW_TILE_DEFAULT):
    # Sublane dim: either the full row count or a multiple of 8; shrink so the
    # (rows, cols, hidden) f32 broadcast temporaries stay within the VMEM budget.
    t = full if full <= default else default
    while t > 8 and t * col_tile * hidden * 4 > _MAX_BCAST_BYTES:
        t = max(8, ((t // 2) + 7) // 8 * 8)
    return t


@functools.partial(jax.jit, static_argnames=("tm", "tl"))
def _boxe_point_score(y, x, *, tm, tl):
    num_labels = y.shape[0]
    hidden = y.shape[-1] // 2
    if x.shape[-1] != hidden:
        raise ValueError(f"x last dim {x.shape[-1]} must equal hidden {hidden}")
    lead = x.shape[:-1]
    x2d = x.reshape(-1, hidden)
    m = x2d.shape[0]

    # Box parameters computed once in the wrapper (cheap parameter preprocessing).
    mn, dl = _split_box(y)                           # each (num_labels, hidden)

    tl_ = _col_tile(num_labels, tl)
    tm_ = _row_tile(m, hidden, tl_, tm)
    grid = (pl.cdiv(m, tm_), pl.cdiv(num_labels, tl_))
    out_dtype = jnp.result_type(x.dtype, y.dtype)

    cost = pl.CostEstimate(
        flops=10 * m * num_labels * hidden,
        transcendentals=m * num_labels,
        bytes_accessed=(x2d.size * x2d.dtype.itemsize
                        + 2 * mn.size * mn.dtype.itemsize
                        + m * num_labels * jnp.dtype(out_dtype).itemsize),
    )

    out = pl.pallas_call(
        _boxe_point_kernel,
        out_shape=jax.ShapeDtypeStruct((m, num_labels), out_dtype),
        grid_spec=pltpu.PrefetchScalarGridSpec(
            num_scalar_prefetch=0,
            grid=grid,
            in_specs=[
                pl.BlockSpec((tm_, hidden), lambda i, j: (i, 0)),   # x rows (reused across label tiles)
                pl.BlockSpec((tl_, hidden), lambda i, j: (j, 0)),   # box mins
                pl.BlockSpec((tl_, hidden), lambda i, j: (j, 0)),   # box deltas
            ],
            out_specs=pl.BlockSpec((tm_, tl_), lambda i, j: (i, j)),
        ),
        compiler_params=pltpu.CompilerParams(
            dimension_semantics=("parallel", "parallel")),
        cost_estimate=cost,
    )(x2d, mn, dl)
    return out.reshape(*lead, num_labels)


@functools.partial(jax.jit, static_argnames=("tp", "tc"))
def _boxe_containment_score(y, x, *, tp, tc):
    if y.shape != x.shape:
        raise ValueError(f"label-label scoring expects x.shape == y.shape, got {x.shape} vs {y.shape}")
    n = y.shape[0]
    hidden = y.shape[-1] // 2

    mn_p, dl_p = _split_box(y)
    mn_c, dl_c = _split_box(x)

    tc_ = _col_tile(n, tc)
    tp_ = _row_tile(n, hidden, tc_, tp)
    grid = (pl.cdiv(n, tp_), pl.cdiv(n, tc_))
    out_dtype = jnp.result_type(x.dtype, y.dtype)

    cost = pl.CostEstimate(
        flops=10 * n * n * hidden,
        transcendentals=n * n,
        bytes_accessed=(4 * n * hidden * mn_p.dtype.itemsize
                        + n * n * jnp.dtype(out_dtype).itemsize),
    )

    out = pl.pallas_call(
        _boxe_containment_kernel,
        out_shape=jax.ShapeDtypeStruct((n, n), out_dtype),
        grid_spec=pltpu.PrefetchScalarGridSpec(
            num_scalar_prefetch=0,
            grid=grid,
            in_specs=[
                pl.BlockSpec((tp_, hidden), lambda i, j: (i, 0)),   # parent mins (parent-tile indexed)
                pl.BlockSpec((tc_, hidden), lambda i, j: (j, 0)),   # parent deltas (child-tile indexed, torch broadcast)
                pl.BlockSpec((tc_, hidden), lambda i, j: (j, 0)),   # child mins
                pl.BlockSpec((tc_, hidden), lambda i, j: (j, 0)),   # child deltas
            ],
            out_specs=pl.BlockSpec((tp_, tc_), lambda i, j: (i, j)),
        ),
        compiler_params=pltpu.CompilerParams(
            dimension_semantics=("parallel", "parallel")),
        cost_estimate=cost,
    )(mn_p, dl_p, mn_c, dl_c)
    return out


def boxe_scorer(y, x, *, tm=_ROW_TILE_DEFAULT, tl=_COL_TILE_DEFAULT):
    """Pallas equivalent of BoxEScorer.forward(y, x)."""
    if y.shape[0] != x.shape[0]:
        return _boxe_point_score(y, x, tm=tm, tl=tl)
    return _boxe_containment_score(y, x, tp=tm, tc=tl)


# ----------------------------------------------------------------------------
# Pure-JAX reference (mirrors the torch code, including its broadcasting)
# ----------------------------------------------------------------------------
def _boxe_reference(y, x):
    h = y.shape[-1] // 2
    mn_y = y[..., :h]
    dl_y = jax.nn.softplus(y[..., h:])
    if y.shape[0] != x.shape[0]:
        mn = mn_y[None]
        dl = dl_y[None]
        mx = mn + dl
        ctr = mn + dl / 2.0
        dp1 = dl + 1.0
        xr = x[:, None, :]
        l1 = jnp.abs(xr - ctr)
        inside = jnp.logical_and(mn <= xr, xr <= mx)
        per_dim = jnp.where(inside, l1 / (dp1 + 1e-10),
                            l1 * dp1 - dl / 2.0 * (dl - 1.0 / (dl + 1e-10)))
        return -jnp.linalg.norm(per_dim, axis=-1)
    mn_x = x[..., :h]
    dl_x = jax.nn.softplus(x[..., h:])
    mn_p = mn_y[:, None, :]                         # (N, 1, H)
    mx_p = mn_p + dl_y[None, :, :]                  # torch broadcast quirk -> (N, N, H)
    mn_c = mn_x[None, :, :]                         # (1, N, H)
    mx_c = mn_c + dl_x[None, :, :]                  # (1, N, H)
    min_v = jnp.where(mn_p <= mn_c, 0.0, jnp.abs(mn_p - mn_c))
    max_v = jnp.where(mx_p >= mx_c, 0.0, jnp.abs(mx_p - mx_c))
    return -jnp.linalg.norm(min_v + max_v, axis=-1)


if __name__ == "__main__":
    key = jax.random.PRNGKey(0)
    k_y, k_x = jax.random.split(key)

    num_labels, hidden, batch = 16, 32, 32
    y = jax.random.normal(k_y, (num_labels, 2 * hidden), dtype=jnp.float32)
    x = jax.random.normal(k_x, (batch, hidden), dtype=jnp.float32)

    # Branch 1: point-in-box scoring (batch != num_labels), default tiles.
    scores = boxe_scorer(y, x)
    jax.block_until_ready(scores)
    ref = _boxe_reference(y, x)
    assert scores.shape == (batch, num_labels), scores.shape
    assert jnp.allclose(scores, ref, atol=1e-4, rtol=1e-5), float(
        jnp.max(jnp.abs(scores - ref)))

    # Same branch with a small explicit row tile to exercise a multi-step grid.
    scores_tiled = boxe_scorer(y, x, tm=8)
    jax.block_until_ready(scores_tiled)
    assert jnp.allclose(scores_tiled, ref, atol=1e-4, rtol=1e-5), float(
        jnp.max(jnp.abs(scores_tiled - ref)))

    # Branch 2: label-label box containment (x is the label matrix itself).
    ll_scores = boxe_scorer(y, y)
    jax.block_until_ready(ll_scores)
    ll_ref = _boxe_reference(y, y)
    assert ll_scores.shape == (num_labels, num_labels), ll_scores.shape
    assert jnp.allclose(ll_scores, ll_ref, atol=1e-4, rtol=1e-5), float(
        jnp.max(jnp.abs(ll_scores - ll_ref)))

    print("KERNEL_OK")
</pallas_src>

<mosaic_0001>
module attributes {stable_mosaic.version = 11 : i64} {
  func.func @_boxe_point_kernel(%arg0: i32, %arg1: i32, %arg2: memref<32x32xf32, #tpu.memory_space<vmem>>, %arg3: memref<16x32xf32, #tpu.memory_space<vmem>>, %arg4: memref<16x32xf32, #tpu.memory_space<vmem>>, %arg5: memref<32x16xf32, #tpu.memory_space<vmem>>) attributes {dimension_semantics = [#tpu.dimension_semantics<parallel>, #tpu.dimension_semantics<parallel>], iteration_bounds = array<i64: 1, 1>, scalar_prefetch = 0 : i64, scratch_operands = 0 : i64, tpu.core_type = #tpu.core_type<tc>, window_params = [{transform_indices = @transform_0, window_bounds = array<i64: 32, 32>}, {transform_indices = @transform_1, window_bounds = array<i64: 16, 32>}, {transform_indices = @transform_2, window_bounds = array<i64: 16, 32>}, {transform_indices = @transform_3, window_bounds = array<i64: 32, 16>}]} {
    %c0 = arith.constant 0 : index
    %c0_0 = arith.constant 0 : index
    %0 = vector.load %arg2[%c0, %c0_0] : memref<32x32xf32, #tpu.memory_space<vmem>>, vector<32x32xf32>
    %c0_1 = arith.constant 0 : index
    %c0_2 = arith.constant 0 : index
    %1 = vector.load %arg3[%c0_1, %c0_2] : memref<16x32xf32, #tpu.memory_space<vmem>>, vector<16x32xf32>
    %c0_3 = arith.constant 0 : index
    %c0_4 = arith.constant 0 : index
    %2 = vector.load %arg4[%c0_3, %c0_4] : memref<16x32xf32, #tpu.memory_space<vmem>>, vector<16x32xf32>
    %3 = arith.addf %1, %2 : vector<16x32xf32>
    %cst = arith.constant 5.000000e-01 : f32
    %4 = vector.broadcast %cst : f32 to vector<16x32xf32>
    %5 = arith.mulf %4, %2 : vector<16x32xf32>
    %6 = arith.addf %1, %5 : vector<16x32xf32>
    %cst_5 = arith.constant 1.000000e+00 : f32
    %7 = vector.broadcast %cst_5 : f32 to vector<16x32xf32>
    %8 = arith.addf %2, %7 : vector<16x32xf32>
    %cst_6 = arith.constant 1.000000e-10 : f32
    %9 = vector.broadcast %cst_6 : f32 to vector<16x32xf32>
    %10 = arith.addf %8, %9 : vector<16x32xf32>
    %cst_7 = arith.constant 1.000000e+00 : f32
    %11 = vector.broadcast %cst_7 : f32 to vector<16x32xf32>
    %12 = arith.divf %11, %10 : vector<16x32xf32>
    %cst_8 = arith.constant 5.000000e-01 : f32
    %13 = vector.broadcast %cst_8 : f32 to vector<16x32xf32>
    %14 = arith.mulf %13, %2 : vector<16x32xf32>
    %cst_9 = arith.constant 1.000000e-10 : f32
    %15 = vector.broadcast %cst_9 : f32 to vector<16x32xf32>
    %16 = arith.addf %2, %15 : vector<16x32xf32>
    %cst_10 = arith.constant 1.000000e+00 : f32
    %17 = vector.broadcast %cst_10 : f32 to vector<16x32xf32>
    %18 = arith.divf %17, %16 : vector<16x32xf32>
    %19 = arith.subf %2, %18 : vector<16x32xf32>
    %20 = arith.mulf %14, %19 : vector<16x32xf32>
    %21 = vector.shape_cast %0 : vector<32x32xf32> to vector<32x1x32xf32>
    %22 = vector.shape_cast %6 : vector<16x32xf32> to vector<1x16x32xf32>
    %23 = vector.broadcast %21 : vector<32x1x32xf32> to vector<32x16x32xf32>
    %24 = vector.broadcast %22 : vector<1x16x32xf32> to vector<32x16x32xf32>
    %25 = arith.subf %23, %24 : vector<32x16x32xf32>
    %26 = math.absf %25 : vector<32x16x32xf32>
    %27 = vector.shape_cast %1 : vector<16x32xf32> to vector<1x16x32xf32>
    %28 = vector.broadcast %27 : vector<1x16x32xf32> to vector<32x16x32xf32>
    %29 = vector.broadcast %21 : vector<32x1x32xf32> to vector<32x16x32xf32>
    %30 = arith.cmpf ole, %28, %29 : vector<32x16x32xf32>
    %31 = vector.shape_cast %3 : vector<16x32xf32> to vector<1x16x32xf32>
    %32 = vector.broadcast %21 : vector<32x1x32xf32> to vector<32x16x32xf32>
    %33 = vector.broadcast %31 : vector<1x16x32xf32> to vector<32x16x32xf32>
    %34 = arith.cmpf ole, %32, %33 : vector<32x16x32xf32>
    %35 = arith.andi %30, %34 : vector<32x16x32xi1>
    %36 = vector.shape_cast %12 : vector<16x32xf32> to vector<1x16x32xf32>
    %37 = vector.broadcast %36 : vector<1x16x32xf32> to vector<32x16x32xf32>
    %38 = arith.mulf %26, %37 : vector<32x16x32xf32>
    %39 = vector.shape_cast %8 : vector<16x32xf32> to vector<1x16x32xf32>
    %40 = vector.broadcast %39 : vector<1x16x32xf32> to vector<32x16x32xf32>
    %41 = arith.mulf %26, %40 : vector<32x16x32xf32>
    %42 = vector.shape_cast %20 : vector<16x32xf32> to vector<1x16x32xf32>
    %43 = vector.broadcast %42 : vector<1x16x32xf32> to vector<32x16x32xf32>
    %44 = arith.subf %41, %43 : vector<32x16x32xf32>
    %45 = arith.select %35, %38, %44 : vector<32x16x32xi1>, vector<32x16x32xf32>
    %46 = arith.mulf %45, %45 : vector<32x16x32xf32>
    %cst_11 = arith.constant dense<0.000000e+00> : vector<32x16xf32>
    %47 = vector.multi_reduction <add>, %46, %cst_11 [2] : vector<32x16x32xf32> to vector<32x16xf32>
    %48 = math.sqrt %47 : vector<32x16xf32>
    %cst_12 = arith.constant 0.000000e+00 : f32
    %49 = vector.broadcast %cst_12 : f32 to vector<32x16xf32>
    %50 = arith.subf %49, %48 : vector<32x16xf32>
    %c0_13 = arith.constant 0 : index
    %c0_14 = arith.constant 0 : index
    %51 = vector.load %arg5[%c0_13, %c0_14] : memref<32x16xf32, #tpu.memory_space<vmem>>, vector<32x16xf32>
    tpu.vector_store %arg5[%c0_13, %c0_14], %50 {strides = array<i32>} : memref<32x16xf32, #tpu.memory_space<vmem>>, vector<32x16xf32>,
    return
  }
  func.func @transform_0(%arg0: i32, %arg1: i32) -> (i32, i32) {
    %c0_i32 = arith.constant 0 : i32
    %c0_i32_0 = arith.constant 0 : i32
    return %arg0, %c0_i32 : i32, i32
  }
  func.func @transform_1(%arg0: i32, %arg1: i32) -> (i32, i32) {
    %c0_i32 = arith.constant 0 : i32
    %c0_i32_0 = arith.constant 0 : i32
    return %arg1, %c0_i32 : i32, i32
  }
  func.func @transform_2(%arg0: i32, %arg1: i32) -> (i32, i32) {
    %c0_i32 = arith.constant 0 : i32
    %c0_i32_0 = arith.constant 0 : i32
    return %arg1, %c0_i32 : i32, i32
  }
  func.func @transform_3(%arg0: i32, %arg1: i32) -> (i32, i32) {
    %c0_i32 = arith.constant 0 : i32
    return %arg0, %arg1 : i32, i32
  }
}

</mosaic_0001>

<bundles_post_ra>
// kernel: _boxe_point_score.1
= control target key start
LH: loop header
LB: loop body
LE: loop exit
PB: predicated region body
PF: predicated region fallthrough
CT: control target
= control target key end

     0   :  { %v54_v0 = vlaneseq  ;;  %v2302_v2 = vmov 1966171168   ;;  %vm1046_vm2 = vcmask 261120   ;;  %s4278_s1 = inlined_call_operand.vmem [shape: f32[16,32], index: 1, kind: input, shape index: {}]   ;;  %s4279_s2 = inlined_call_operand.vmem [shape: f32[16,32], index: 2, kind: input, shape index: {}]   ;;  %s4280_s0 = inlined_call_operand.vmem [shape: f32[32,32], index: 0, kind: input, shape index: {}]   ;;  %s4281_s3 = inlined_call_operand.vmem [shape: f32[32,16], index: 3, kind: output, shape index: {}]  }
   0x1   :  { %v2326_v1 = vld [vmem:[%s4279_s2] sm:$0xff]  ;;  %v52_v3 = vunpack.c.l.s4 %v2302_v2  ;;  %v2347_v12 = vld [vmem:[%s4278_s1 + $0x8] sm:$0xff]  ;;  %v2381_v23 = vld.sshfl [vmem:[%s4280_s0 + $0x10] sm:$0xff pattern:$0x75316420] }
   0x2   :  { %v2331_v4 = vld [vmem:[%s4278_s1] sm:$0xff]  ;;  %v2334_v5 = vmul.f32 0.5, %v2326_v1  ;;  %v2337_v6 = vadd.f32 1.0, %v2326_v1  ;;  %v36_v7 = vadd.f32 1e-10, %v2326_v1  ;;  %v55_v10 = vshrl.u32 %v54_v0, 7 }
   0x3   :  { %v2342_v8 = vadd.f32 %v2326_v1, %v2331_v4  ;;  %v53_v9 = vunpack.c.0.s8 %v52_v3  ;;  %v1816_v11 = vand.u32 127, %v54_v0  ;;  %v2352_v13 = vld [vmem:[%s4279_s2 + $0x8] sm:$0xff]  ;;  %v14_v14 = vld [vmem:[%s4280_s0] sm:$0xff]  ;;  %v2397_v31 = vld.sshfl [vmem:[%s4280_s0 + $0x18] sm:$0xff pattern:$0x75316420]  ;;  %v163_v43 = vcombine.high %v2381_v23, %v2381_v23 }
   0x4   :  { %v30_v15 = vadd.f32 1e-10, %v2337_v6  ;;  %2160 = vrcp.f32 %v36_v7  ;;  %v2360_v16 = vadd.f32 %v2352_v13, %v2347_v12  ;;  %v2363_v17 = vmul.f32 0.5, %v2352_v13  ;;  %v2368_v18 = vld [vmem:[%s4280_s0 + $0x8] sm:$0xff] }
   0x5   :  { %v2372_v19 = vadd.f32 %v2334_v5, %v2331_v4  ;;  %v2374_v20 = vsub.s32 %v53_v9, %v55_v10  ;;  %v2376_v21 = vsub.s32 %v1816_v11, %v55_v10  ;;  %v1821_v22 = vadd.s32 4294967288, %v1816_v11 }
   0x6   :  { %2162 = vrcp.f32 %v30_v15  ;;  %v2383_v24 = vsub.s32 0, %v55_v10  ;;  %v2386_v25 = vadd.f32 1.0, %v2352_v13  ;;  %v37_v26 = vadd.f32 1e-10, %v2352_v13 }
   0x7   :  { %v57_v27 = vrot.slane %v14_v14, %v2374_v20  ;;  %v2390_v28 = vsub.s32 %v1821_v22, %v55_v10  ;;  %v50_v29 = vcombine.high %v14_v14, %v14_v14  ;;  %v106_v30 = vrot.slane %v2368_v18, %v2374_v20 }
   0x8   :  { %v2401_v32 = vadd.f32 %v2363_v17, %v2347_v12  ;;  %v31_v33 = vadd.f32 1e-10, %v2386_v25  ;;  %2164 = vrcp.f32 %v37_v26  ;;  %v2415_v39 = vrot.slane %v2381_v23, %v2374_v20 }
   0x9   :  { %v2405_v34 = vrot.slane %v57_v27, %v2374_v20  ;;  %v2408_v35 = vrot.slane %v50_v29, %v2374_v20  ;;  %v2411_v36 = vrot.slane %v106_v30, %v2374_v20  ;;  %v65_v37 = vcombine.high %v57_v27, %v57_v27 }
   0xa   :  { %2166 = vrcp.f32 %v31_v33  ;;  %v114_v38 = vcombine.high %v106_v30, %v106_v30  ;;  %v2490_v15 = vrot.slane %v2415_v39, %v2383_v24 }
   0xb   :  { %v249_v40 = vrot.slane %v2405_v34, %v2383_v24  ;;  %v2421_v41 = vrot.slane %v2408_v35, %v2374_v20  ;;  %v2425_v42 = vrot.slane %v2411_v36, %v2383_v24  ;;  %v2430_v44 = vrot.slane %v65_v37, %v2374_v20 }
   0xc   :  { %v95_v45 = vcombine.high %v2405_v34, %v2405_v34  ;;  %v66_v46 = vcombine.high %v2408_v35, %v2408_v35  ;;  %v2437_v47 = vrot.slane %v114_v38, %v2374_v20 }
   0xd   :  { %v406_v48 = vsub.f32 %v249_v40, %v2372_v19  ;;  %vm534_vm0 = vcmp.le.f32.partialorder %v2331_v4, %v249_v40  ;;  %vm598_vm1 = vcmp.le.f32.partialorder %v249_v40, %v2342_v8  ;;  %v2444_v49 = vrot.slane %v2421_v41, %v2383_v24 }
   0xe   :  { %v2161_v50 = vpop.eup %2160  ;;  %v407_v51 = vsub.f32 %v249_v40, %v2401_v32  ;;  %vm535_vm3 = vcmp.le.f32.partialorder %v2347_v12, %v249_v40  ;;  %vm599_vm4 = vcmp.le.f32.partialorder %v249_v40, %v2360_v16  ;;  %v422_v52 = vsub.f32 %v2425_v42, %v2372_v19  ;;  %vm662_vm8 = vmand %vm534_vm0, %vm598_vm1 }
   0xf   :  { %v42_v53 = vsub.f32 %v2326_v1, %v2161_v50  ;;  %v470_v54 = vand.u32 2147483647, %v406_v48  ;;  %v415_v55 = vsub.f32 %v2444_v49, %v2401_v32  ;;  %vm543_vm5 = vcmp.le.f32.partialorder %v2347_v12, %v2444_v49  ;;  %vm2500_vm12 = vmand %vm535_vm3, %vm599_vm4 }
  0x10   :  { %v2456_v56 = vpop.eup %2162  ;;  %vm607_vm6 = vcmp.le.f32.partialorder %v2444_v49, %v2360_v16  ;;  %v471_v57 = vand.u32 2147483647, %v407_v51  ;;  %v486_v58 = vand.u32 2147483647, %v422_v52  ;;  %vm550_vm7 = vcmp.le.f32.partialorder %v2331_v4, %v2425_v42 }
  0x11   :  { %v2463_v59 = vmul.f32 %v42_v53, %v2334_v5  ;;  %v726_v60 = vmul.f32 %v2456_v56, %v470_v54  ;;  %v790_v61 = vmul.f32 %v470_v54, %v2337_v6  ;;  %v479_v62 = vand.u32 2147483647, %v415_v55  ;;  %vm671_vm13 = vmand %vm543_vm5, %vm607_vm6 }
  0x12   :  { %v2165_v63 = vpop.eup %2164  ;;  %v791_v0 = vmul.f32 %v471_v57, %v2386_v25  ;;  %vm614_vm9 = vcmp.le.f32.partialorder %v2425_v42, %v2342_v8  ;;  %v742_v1 = vmul.f32 %v2456_v56, %v486_v58  ;;  %v806_v2 = vmul.f32 %v486_v58, %v2337_v6 }
  0x13   :  { %v854_v3 = vsub.f32 %v790_v61, %v2463_v59  ;;  %v43_v5 = vsub.f32 %v2352_v13, %v2165_v63  ;;  %v799_v7 = vmul.f32 %v479_v62, %v2386_v25  ;;  %vm678_vm10 = vmand %vm550_vm7, %vm614_vm9  ;;  %v253_v9 = vrot.slane %v2430_v44, %v2383_v24 }
  0x14   :  { %v2481_v10 = vpop.eup %2166  ;;  %v870_v11 = vsub.f32 %v806_v2, %v2463_v59  ;;  %v414_v14 = vsub.f32 %v2444_v49, %v2372_v19  ;;  %vm542_vm11 = vcmp.le.f32.partialorder %v2331_v4, %v2444_v49  ;;  %vm606_vm14 = vcmp.le.f32.partialorder %v2444_v49, %v2342_v8 }
  0x15   :  { %v918_v13 = vsel %vm662_vm8, %v726_v60, %v854_v3  ;;  %v2493_v22 = vmul.f32 %v43_v5, %v2363_v17  ;;  %v735_v26 = vmul.f32 %v2481_v10, %v479_v62  ;;  %v727_v29 = vmul.f32 %v2481_v10, %v471_v57  ;;  %vm670_vm5 = vmand %vm542_vm11, %vm606_vm14 }
  0x16   :  { %v982_v30 = vmul.f32 %v918_v13, %v918_v13  ;;  %v934_v17 = vsel %vm678_vm10, %v742_v1, %v870_v11  ;;  %v408_v33 = vsub.f32 %v253_v9, %v2372_v19  ;;  %vm536_vm15 = vcmp.le.f32.partialorder %v2331_v4, %v253_v9 }
  0x17   :  { %v863_v37 = vsub.f32 %v799_v7, %v2493_v22  ;;  %v855_v38 = vsub.f32 %v791_v0, %v2493_v22  ;;  %vm600_vm0 = vcmp.le.f32.partialorder %v253_v9, %v2342_v8  ;;  %v478_v50 = vand.u32 2147483647, %v414_v14 }
  0x18   :  { %v1047_v40 = vsel %vm1046_vm2, %v982_v30, 0.0  ;;  %v472_v48 = vand.u32 2147483647, %v408_v33  ;;  %v409_v51 = vsub.f32 %v253_v9, %v2401_v32  ;;  %v998_v54 = vmul.f32 %v934_v17, %v934_v17  ;;  %vm2527_vm3 = vmand %vm536_vm15, %vm600_vm0 }
  0x19   :  { %1048 = vadd.xlane.f32.xlu0 %v1047_v40  ;;  %v927_v52 = vsel %vm671_vm13, %v735_v26, %v863_v37  ;;  %v919_v53 = vsel %vm2500_vm12, %v727_v29, %v855_v38  ;;  %vm537_vm1 = vcmp.le.f32.partialorder %v2347_v12, %v253_v9  ;;  %v734_v62 = vmul.f32 %v2456_v56, %v478_v50 }
  0x1a   :  { %v991_v55 = vmul.f32 %v927_v52, %v927_v52  ;;  %v983_v57 = vmul.f32 %v919_v53, %v919_v53  ;;  %v728_v58 = vmul.f32 %v2456_v56, %v472_v48  ;;  %v792_v60 = vmul.f32 %v472_v48, %v2337_v6 }
  0x1b   :  { %v798_v63 = vmul.f32 %v478_v50, %v2337_v6  ;;  %v473_v0 = vand.u32 2147483647, %v409_v51  ;;  %vm601_vm4 = vcmp.le.f32.partialorder %v253_v9, %v2360_v16  ;;  %v257_v5 = vrot.slane %v95_v45, %v2383_v24 }
  0x1c   :  { %v1074_v1 = vsel %vm1046_vm2, %v991_v55, 0.0  ;;  %v1050_v2 = vsel %vm1046_vm2, %v983_v57, 0.0  ;;  %v856_v3 = vsub.f32 %v792_v60, %v2463_v59  ;;  %v1095_v7 = vsel %vm1046_vm2, %v998_v54, 0.0  ;;  %vm665_vm6 = vmand %vm537_vm1, %vm601_vm4 }
  0x1d   :  { %1075 = vadd.xlane.f32.xlu1 %v1074_v1  ;;  %1051 = vadd.xlane.f32.xlu0 %v1050_v2  ;;  %v862_v11 = vsub.f32 %v798_v63, %v2463_v59  ;;  %v729_v14 = vmul.f32 %v2481_v10, %v473_v0  ;;  %v793_v13 = vmul.f32 %v473_v0, %v2386_v25 }
  0x1e   :  { %v920_v26 = vsel %vm2527_vm3, %v728_v58, %v856_v3  ;;  %v410_v49 = vsub.f32 %v257_v5, %v2372_v19  ;;  %vm538_vm7 = vcmp.le.f32.partialorder %v2331_v4, %v257_v5  ;;  %vm602_vm8 = vcmp.le.f32.partialorder %v257_v5, %v2342_v8 }
  0x1f   :  { %v984_v34 = vmul.f32 %v920_v26, %v920_v26  ;;  %v926_v45 = vsel %vm670_vm5, %v734_v62, %v862_v11  ;;  %v857_v27 = vsub.f32 %v793_v13, %v2493_v22  ;;  %v411_v29 = vsub.f32 %v257_v5, %v2401_v32  ;;  %vm666_vm11 = vmand %vm538_vm7, %vm602_vm8 }
  0x20   :  { %v990_v30 = vmul.f32 %v926_v45, %v926_v45  ;;  %v474_v17 = vand.u32 2147483647, %v410_v49  ;;  %vm539_vm9 = vcmp.le.f32.partialorder %v2347_v12, %v257_v5  ;;  %vm603_vm10 = vcmp.le.f32.partialorder %v257_v5, %v2360_v16 }
  0x21   :  { %1096 = vadd.xlane.f32.xlu1 %v1095_v7  ;;  %v1053_v9 = vsel %vm1046_vm2, %v984_v34, 0.0  ;;  %v921_v33 = vsel %vm665_vm6, %v729_v14, %v857_v27  ;;  %v475_v37 = vand.u32 2147483647, %v411_v29  ;;  %v94_v38 = vrot.slane %v66_v46, %v2374_v20  ;;  %vm667_vm12 = vmand %vm539_vm9, %vm603_vm10 }
  0x22   :  { %v1071_v40 = vsel %vm1046_vm2, %v990_v30, 0.0  ;;  %v985_v48 = vmul.f32 %v921_v33, %v921_v33  ;;  %v730_v50 = vmul.f32 %v2456_v56, %v474_v17  ;;  %v794_v51 = vmul.f32 %v474_v17, %v2337_v6 }
  0x23   :  { %1072 = vadd.xlane.f32.xlu0 %v1071_v40  ;;  %v731_v52 = vmul.f32 %v2481_v10, %v475_v37  ;;  %v795_v53 = vmul.f32 %v475_v37, %v2386_v25  ;;  %v269_v35 = vrot.slane %v94_v38, %v2383_v24  ;;  %v96_v46 = vcombine.high %v2421_v41, %v2421_v41 }
  0x24   :  { %v1056_v54 = vsel %vm1046_vm2, %v985_v48, 0.0  ;;  %v858_v55 = vsub.f32 %v794_v51, %v2463_v59  ;;  %v97_v57 = vcombine.high %v2430_v44, %v2430_v44  ;;  %v98_v58 = vcombine.high %v94_v38, %v94_v38 }
  0x25   :  { %1054 = vadd.xlane.f32.xlu1 %v1053_v9  ;;  %v859_v60 = vsub.f32 %v795_v53, %v2493_v22  ;;  %v416_v61 = vsub.f32 %v269_v35, %v2372_v19  ;;  %vm544_vm13 = vcmp.le.f32.partialorder %v2331_v4, %v269_v35  ;;  %vm608_vm14 = vcmp.le.f32.partialorder %v269_v35, %v2342_v8 }
  0x26   :  { %v922_v41 = vsel %vm666_vm11, %v730_v50, %v858_v55  ;;  %v417_v62 = vsub.f32 %v269_v35, %v2401_v32  ;;  %vm545_vm15 = vcmp.le.f32.partialorder %v2347_v12, %v269_v35  ;;  %vm609_vm0 = vcmp.le.f32.partialorder %v269_v35, %v2360_v16  ;;  %vm672_vm1 = vmand %vm544_vm13, %vm608_vm14 }
  0x27   :  { %v986_v63 = vmul.f32 %v922_v41, %v922_v41  ;;  %v923_v0 = vsel %vm667_vm12, %v731_v52, %v859_v60  ;;  %v480_v44 = vand.u32 2147483647, %v416_v61  ;;  %v273_v1 = vrot.slane %v96_v46, %v2383_v24  ;;  %vm673_vm4 = vmand %vm545_vm15, %vm609_vm0 }
  0x28   :  { %v987_v2 = vmul.f32 %v923_v0, %v923_v0  ;;  %v481_v3 = vand.u32 2147483647, %v417_v62  ;;  %v2596_v5 = vrot.slane %v97_v57, %v2383_v24  ;;  %v2599_v7 = vrot.slane %v98_v58, %v2383_v24 }
  0x29   :  { %1057 = vadd.xlane.f32.xlu1 %v1056_v54  ;;  %v1059_v11 = vsel %vm1046_vm2, %v986_v63, 0.0  ;;  %v736_v14 = vmul.f32 %v2456_v56, %v480_v44  ;;  %v800_v13 = vmul.f32 %v480_v44, %v2337_v6  ;;  %v418_v26 = vsub.f32 %v273_v1, %v2372_v19 }
  0x2a   :  { %1060 = vadd.xlane.f32.xlu0 %v1059_v11  ;;  %v1062_v49 = vsel %vm1046_vm2, %v987_v2, 0.0  ;;  %v737_v34 = vmul.f32 %v2481_v10, %v481_v3  ;;  %v801_v45 = vmul.f32 %v481_v3, %v2386_v25  ;;  %vm546_vm3 = vcmp.le.f32.partialorder %v2331_v4, %v273_v1 }
  0x2b   :  { %v864_v27 = vsub.f32 %v800_v13, %v2463_v59  ;;  %v482_v29 = vand.u32 2147483647, %v418_v26  ;;  %vm610_vm5 = vcmp.le.f32.partialorder %v273_v1, %v2342_v8  ;;  %v419_v30 = vsub.f32 %v273_v1, %v2401_v32 }
  0x2c   :  { %v865_v17 = vsub.f32 %v801_v45, %v2493_v22  ;;  %vm547_vm6 = vcmp.le.f32.partialorder %v2347_v12, %v273_v1  ;;  %vm611_vm7 = vcmp.le.f32.partialorder %v273_v1, %v2360_v16  ;;  %v412_v9 = vsub.f32 %v2596_v5, %v2372_v19  ;;  %vm674_vm8 = vmand %vm546_vm3, %vm610_vm5 }
  0x2d   :  { %1063 = vadd.xlane.f32.xlu1 %v1062_v49  ;;  %v928_v33 = vsel %vm672_vm1, %v736_v14, %v864_v27  ;;  %v738_v37 = vmul.f32 %v2456_v56, %v482_v29  ;;  %v802_v38 = vmul.f32 %v482_v29, %v2337_v6  ;;  %v483_v40 = vand.u32 2147483647, %v419_v30  ;;  %vm675_vm10 = vmand %vm547_vm6, %vm611_vm7 }
  0x2e   :  { %v992_v48 = vmul.f32 %v928_v33, %v928_v33  ;;  %v929_v50 = vsel %vm673_vm4, %v737_v34, %v865_v17  ;;  %v476_v51 = vand.u32 2147483647, %v412_v9  ;;  %vm540_vm9 = vcmp.le.f32.partialorder %v2331_v4, %v2596_v5 }
  0x2f   :  { %v993_v52 = vmul.f32 %v929_v50, %v929_v50  ;;  %v866_v53 = vsub.f32 %v802_v38, %v2463_v59  ;;  %v739_v35 = vmul.f32 %v2481_v10, %v483_v40  ;;  %v803_v46 = vmul.f32 %v483_v40, %v2386_v25 }
  0x30   :  { %v1077_v54 = vsel %vm1046_vm2, %v992_v48, 0.0  ;;  %vm604_vm11 = vcmp.le.f32.partialorder %v2596_v5, %v2342_v8  ;;  %v732_v55 = vmul.f32 %v2456_v56, %v476_v51  ;;  %v796_v57 = vmul.f32 %v476_v51, %v2337_v6 }
  0x31   :  { %1078 = vadd.xlane.f32.xlu0 %v1077_v54  ;;  %v1080_v58 = vsel %vm1046_vm2, %v993_v52, 0.0  ;;  %v930_v60 = vsel %vm674_vm8, %v738_v37, %v866_v53  ;;  %v867_v61 = vsub.f32 %v803_v46, %v2493_v22  ;;  %vm668_vm12 = vmand %vm540_vm9, %vm604_vm11  ;;  %v413_v41 = vsub.f32 %v2596_v5, %v2401_v32 }
  0x32   :  { %1081 = vadd.xlane.f32.xlu1 %v1080_v58  ;;  %v994_v62 = vmul.f32 %v930_v60, %v930_v60  ;;  %v860_v63 = vsub.f32 %v796_v57, %v2463_v59  ;;  %vm541_vm13 = vcmp.le.f32.partialorder %v2347_v12, %v2596_v5  ;;  %vm605_vm14 = vcmp.le.f32.partialorder %v2596_v5, %v2360_v16 }
  0x33   :  { %v931_v0 = vsel %vm675_vm10, %v739_v35, %v867_v61  ;;  %v477_v44 = vand.u32 2147483647, %v413_v41  ;;  %v420_v1 = vsub.f32 %v2599_v7, %v2372_v19  ;;  %vm548_vm15 = vcmp.le.f32.partialorder %v2331_v4, %v2599_v7  ;;  %vm669_vm1 = vmand %vm541_vm13, %vm605_vm14 }
  0x34   :  { %v1083_v2 = vsel %vm1046_vm2, %v994_v62, 0.0  ;;  %v995_v3 = vmul.f32 %v931_v0, %v931_v0  ;;  %v924_v11 = vsel %vm668_vm12, %v732_v55, %v860_v63  ;;  %vm612_vm0 = vcmp.le.f32.partialorder %v2599_v7, %v2342_v8 }
  0x35   :  { %1084 = vadd.xlane.f32.xlu0 %v1083_v2  ;;  %v988_v14 = vmul.f32 %v924_v11, %v924_v11  ;;  %v733_v13 = vmul.f32 %v2481_v10, %v477_v44  ;;  %v797_v26 = vmul.f32 %v477_v44, %v2386_v25  ;;  %v484_v49 = vand.u32 2147483647, %v420_v1  ;;  %vm676_vm4 = vmand %vm548_vm15, %vm612_vm0 }
  0x36   :  { %v1086_v34 = vsel %vm1046_vm2, %v995_v3, 0.0  ;;  %v285_v45 = vrot.slane %v2437_v47, %v2383_v24  ;;  %v423_v27 = vsub.f32 %v2425_v42, %v2401_v32  ;;  %vm551_vm3 = vcmp.le.f32.partialorder %v2347_v12, %v2425_v42 }
  0x37   :  { %1087 = vadd.xlane.f32.xlu1 %v1086_v34  ;;  %v1065_v29 = vsel %vm1046_vm2, %v988_v14, 0.0  ;;  %v861_v30 = vsub.f32 %v797_v26, %v2493_v22  ;;  %v740_v17 = vmul.f32 %v2456_v56, %v484_v49  ;;  %v804_v9 = vmul.f32 %v484_v49, %v2337_v6 }
  0x38   :  { %v424_v5 = vsub.f32 %v285_v45, %v2372_v19  ;;  %vm552_vm5 = vcmp.le.f32.partialorder %v2331_v4, %v285_v45  ;;  %vm616_vm6 = vcmp.le.f32.partialorder %v285_v45, %v2342_v8  ;;  %v487_v33 = vand.u32 2147483647, %v423_v27 }
  0x39   :  { %1066 = vadd.xlane.f32.xlu0 %v1065_v29  ;;  %v925_v37 = vsel %vm669_vm1, %v733_v13, %v861_v30  ;;  %v868_v38 = vsub.f32 %v804_v9, %v2463_v59  ;;  %vm615_vm7 = vcmp.le.f32.partialorder %v2425_v42, %v2360_v16  ;;  %v438_v40 = vsub.f32 %v2490_v15, %v2372_v19  ;;  %vm680_vm11 = vmand %vm552_vm5, %vm616_vm6 }
  0x3a   :  { %v989_v48 = vmul.f32 %v925_v37, %v925_v37  ;;  %v488_v50 = vand.u32 2147483647, %v424_v5  ;;  %v743_v51 = vmul.f32 %v2481_v10, %v487_v33  ;;  %v807_v52 = vmul.f32 %v487_v33, %v2386_v25  ;;  %vm679_vm10 = vmand %vm551_vm3, %vm615_vm7 }
  0x3b   :  { %v932_v53 = vsel %vm676_vm4, %v740_v17, %v868_v38  ;;  %v502_v35 = vand.u32 2147483647, %v438_v40  ;;  %vm566_vm8 = vcmp.le.f32.partialorder %v2331_v4, %v2490_v15  ;;  %vm630_vm9 = vcmp.le.f32.partialorder %v2490_v15, %v2342_v8 }
  0x3c   :  { %v1068_v46 = vsel %vm1046_vm2, %v989_v48, 0.0  ;;  %v996_v54 = vmul.f32 %v932_v53, %v932_v53  ;;  %v744_v55 = vmul.f32 %v2456_v56, %v488_v50  ;;  %v808_v57 = vmul.f32 %v488_v50, %v2337_v6  ;;  %vm694_vm12 = vmand %vm566_vm8, %vm630_vm9 }
  0x3d   :  { %1069 = vadd.xlane.f32.xlu1 %v1068_v46  ;;  %v871_v58 = vsub.f32 %v807_v52, %v2493_v22  ;;  %v758_v60 = vmul.f32 %v2456_v56, %v502_v35  ;;  %v822_v61 = vmul.f32 %v502_v35, %v2337_v6  ;;  %v425_v41 = vsub.f32 %v285_v45, %v2401_v32 }
  0x3e   :  { %v1089_v62 = vsel %vm1046_vm2, %v996_v54, 0.0  ;;  %v872_v63 = vsub.f32 %v808_v57, %v2463_v59  ;;  %vm553_vm13 = vcmp.le.f32.partialorder %v2347_v12, %v285_v45  ;;  %vm617_vm14 = vcmp.le.f32.partialorder %v285_v45, %v2360_v16 }
  0x3f   :  { %1090 = vadd.xlane.f32.xlu0 %v1089_v62  ;;  %v935_v42 = vsel %vm679_vm10, %v743_v51, %v871_v58  ;;  %v886_v0 = vsub.f32 %v822_v61, %v2463_v59  ;;  %v489_v44 = vand.u32 2147483647, %v425_v41  ;;  %v2724_v1 = vrot.slane %v163_v43, %v2374_v20  ;;  %vm681_vm0 = vmand %vm553_vm13, %vm617_vm14 }
  0x40   :  { %v936_v2 = vsel %vm680_vm11, %v744_v55, %v872_v63  ;;  %v999_v3 = vmul.f32 %v935_v42, %v935_v42  ;;  %v439_v11 = vsub.f32 %v2490_v15, %v2401_v32  ;;  %vm567_vm15 = vcmp.le.f32.partialorder %v2347_v12, %v2490_v15 }
  0x41   :  { %v1000_v14 = vmul.f32 %v936_v2, %v936_v2  ;;  %v950_v13 = vsel %vm694_vm12, %v758_v60, %v886_v0  ;;  %v745_v26 = vmul.f32 %v2481_v10, %v489_v44  ;;  %v809_v49 = vmul.f32 %v489_v44, %v2386_v25 }
  0x42   :  { %v1098_v34 = vsel %vm1046_vm2, %v999_v3, 0.0  ;;  %v1014_v27 = vmul.f32 %v950_v13, %v950_v13  ;;  %v317_v23 = vrot.slane %v2724_v1, %v2383_v24  ;;  %v503_v43 = vand.u32 2147483647, %v439_v11 }
  0x43   :  { %v1101_v29 = vsel %vm1046_vm2, %v1000_v14, 0.0  ;;  %1099 = vadd.xlane.f32.xlu0 %v1098_v34  ;;  %v873_v30 = vsub.f32 %v809_v49, %v2493_v22  ;;  %vm631_vm1 = vcmp.le.f32.partialorder %v2490_v15, %v2360_v16  ;;  %v2745_v17 = vrot.slane %v2397_v31, %v2374_v20 }
  0x44   :  { %1102 = vadd.xlane.f32.xlu1 %v1101_v29  ;;  %v1143_v45 = vsel %vm1046_vm2, %v1014_v27, 0.0  ;;  %v440_v9 = vsub.f32 %v317_v23, %v2372_v19  ;;  %vm568_vm3 = vcmp.le.f32.partialorder %v2331_v4, %v317_v23  ;;  %vm632_vm4 = vcmp.le.f32.partialorder %v317_v23, %v2342_v8  ;;  %vm695_vm5 = vmand %vm567_vm15, %vm631_vm1 }
  0x45   :  { %v937_v5 = vsel %vm681_vm0, %v745_v26, %v873_v30  ;;  %v759_v33 = vmul.f32 %v2481_v10, %v503_v43  ;;  %v823_v37 = vmul.f32 %v503_v43, %v2386_v25  ;;  %v345_v38 = vrot.slane %v2745_v17, %v2383_v24  ;;  %vm696_vm9 = vmand %vm568_vm3, %vm632_vm4 }
  0x46   :  { %v1001_v40 = vmul.f32 %v937_v5, %v937_v5  ;;  %v504_v48 = vand.u32 2147483647, %v440_v9  ;;  %v441_v50 = vsub.f32 %v317_v23, %v2401_v32  ;;  %vm569_vm6 = vcmp.le.f32.partialorder %v2347_v12, %v317_v23 }
  0x47   :  { %v887_v51 = vsub.f32 %v823_v37, %v2493_v22  ;;  %v454_v52 = vsub.f32 %v345_v38, %v2372_v19  ;;  %vm582_vm7 = vcmp.le.f32.partialorder %v2331_v4, %v345_v38  ;;  %vm646_vm8 = vcmp.le.f32.partialorder %v345_v38, %v2342_v8 }
  0x48   :  { %1144 = vadd.xlane.f32.xlu1 %v1143_v45  ;;  %v1104_v53 = vsel %vm1046_vm2, %v1001_v40, 0.0  ;;  %v760_v35 = vmul.f32 %v2456_v56, %v504_v48  ;;  %v824_v15 = vmul.f32 %v504_v48, %v2337_v6  ;;  %v505_v46 = vand.u32 2147483647, %v441_v50  ;;  %vm710_vm12 = vmand %vm582_vm7, %vm646_vm8 }
  0x49   :  { %1105 = vadd.xlane.f32.xlu0 %v1104_v53  ;;  %v951_v54 = vsel %vm695_vm5, %v759_v33, %v887_v51  ;;  %v518_v55 = vand.u32 2147483647, %v454_v52  ;;  %vm633_vm10 = vcmp.le.f32.partialorder %v317_v23, %v2360_v16  ;;  %v212_v57 = vcombine.high %v2397_v31, %v2397_v31 }
  0x4a   :  { %v888_v58 = vsub.f32 %v824_v15, %v2463_v59  ;;  %v1015_v60 = vmul.f32 %v951_v54, %v951_v54  ;;  %v761_v61 = vmul.f32 %v2481_v10, %v505_v46  ;;  %v825_v41 = vmul.f32 %v505_v46, %v2386_v25  ;;  %vm697_vm11 = vmand %vm569_vm6, %vm633_vm10 }
  0x4b   :  { %v774_v62 = vmul.f32 %v2456_v56, %v518_v55  ;;  %v838_v63 = vmul.f32 %v518_v55, %v2337_v6  ;;  %v2782_v42 = vrot.slane %v212_v57, %v2374_v20  ;;  %v455_v0 = vsub.f32 %v345_v38, %v2401_v32 }
  0x4c   :  { %v952_v31 = vsel %vm696_vm9, %v760_v35, %v888_v58  ;;  %v1146_v44 = vsel %vm1046_vm2, %v1015_v60, 0.0  ;;  %v889_v2 = vsub.f32 %v825_v41, %v2493_v22  ;;  %vm583_vm13 = vcmp.le.f32.partialorder %v2347_v12, %v345_v38 }
  0x4d   :  { %v1016_v3 = vmul.f32 %v952_v31, %v952_v31  ;;  %1147 = vadd.xlane.f32.xlu0 %v1146_v44  ;;  %v902_v11 = vsub.f32 %v838_v63, %v2463_v59  ;;  %v349_v14 = vrot.slane %v2782_v42, %v2383_v24  ;;  %v519_v13 = vand.u32 2147483647, %v455_v0 }
  0x4e   :  { %v953_v26 = vsel %vm697_vm11, %v761_v61, %v889_v2  ;;  %vm647_vm14 = vcmp.le.f32.partialorder %v345_v38, %v2360_v16  ;;  %v144_v49 = vcombine.high %v2411_v36, %v2411_v36  ;;  %v193_v34 = vcombine.high %v2415_v39, %v2415_v39 }
  0x4f   :  { %v1149_v27 = vsel %vm1046_vm2, %v1016_v3, 0.0  ;;  %v966_v23 = vsel %vm710_vm12, %v774_v62, %v902_v11  ;;  %v1017_v43 = vmul.f32 %v953_v26, %v953_v26  ;;  %v456_v29 = vsub.f32 %v349_v14, %v2372_v19  ;;  %vm711_vm1 = vmand %vm583_vm13, %vm647_vm14 }
  0x50   :  { %1150 = vadd.xlane.f32.xlu1 %v1149_v27  ;;  %v1030_v30 = vmul.f32 %v966_v23, %v966_v23  ;;  %vm584_vm15 = vcmp.le.f32.partialorder %v2331_v4, %v349_v14  ;;  %vm648_vm0 = vcmp.le.f32.partialorder %v349_v14, %v2342_v8  ;;  %v775_v45 = vmul.f32 %v2481_v10, %v519_v13 }
  0x51   :  { %v1152_v9 = vsel %vm1046_vm2, %v1017_v43, 0.0  ;;  %v520_v36 = vand.u32 2147483647, %v456_v29  ;;  %v839_v5 = vmul.f32 %v519_v13, %v2386_v25  ;;  %v289_v39 = vrot.slane %v144_v49, %v2383_v24  ;;  %vm712_vm5 = vmand %vm584_vm15, %vm648_vm0 }
  0x52   :  { %v1191_v33 = vsel %vm1046_vm2, %v1030_v30, 0.0  ;;  %1153 = vadd.xlane.f32.xlu0 %v1152_v9  ;;  %v457_v37 = vsub.f32 %v349_v14, %v2401_v32  ;;  %vm585_vm3 = vcmp.le.f32.partialorder %v2347_v12, %v349_v14  ;;  %vm649_vm4 = vcmp.le.f32.partialorder %v349_v14, %v2360_v16 }
  0x53   :  { %v776_v40 = vmul.f32 %v2456_v56, %v520_v36  ;;  %v840_v48 = vmul.f32 %v520_v36, %v2337_v6  ;;  %v903_v50 = vsub.f32 %v839_v5, %v2493_v22  ;;  %v426_v51 = vsub.f32 %v289_v39, %v2372_v19  ;;  %vm713_vm8 = vmand %vm585_vm3, %vm649_vm4 }
  0x54   :  { %1192 = vadd.xlane.f32.xlu1 %v1191_v33  ;;  %vm554_vm6 = vcmp.le.f32.partialorder %v2331_v4, %v289_v39  ;;  %vm618_vm7 = vcmp.le.f32.partialorder %v289_v39, %v2342_v8  ;;  %v521_v38 = vand.u32 2147483647, %v457_v37  ;;  %v321_v52 = vrot.slane %v193_v34, %v2383_v24 }
  0x55   :  { %v904_v53 = vsub.f32 %v840_v48, %v2463_v59  ;;  %v967_v35 = vsel %vm711_vm1, %v775_v45, %v903_v50  ;;  %v490_v15 = vand.u32 2147483647, %v426_v51  ;;  %v427_v46 = vsub.f32 %v289_v39, %v2401_v32  ;;  %vm682_vm10 = vmand %vm554_vm6, %vm618_vm7 }
  0x56   :  { %v1031_v54 = vmul.f32 %v967_v35, %v967_v35  ;;  %v777_v55 = vmul.f32 %v2481_v10, %v521_v38  ;;  %v841_v57 = vmul.f32 %v521_v38, %v2386_v25  ;;  %v442_v58 = vsub.f32 %v321_v52, %v2372_v19 }
  0x57   :  { %v968_v60 = vsel %vm712_vm5, %v776_v40, %v904_v53  ;;  %v746_v61 = vmul.f32 %v2456_v56, %v490_v15  ;;  %v810_v41 = vmul.f32 %v490_v15, %v2337_v6  ;;  %vm570_vm9 = vcmp.le.f32.partialorder %v2331_v4, %v321_v52 }
  0x58   :  { %v1032_v62 = vmul.f32 %v968_v60, %v968_v60  ;;  %v1194_v63 = vsel %vm1046_vm2, %v1031_v54, 0.0  ;;  %v905_v0 = vsub.f32 %v841_v57, %v2493_v22  ;;  %v506_v31 = vand.u32 2147483647, %v442_v58 }
  0x59   :  { %1195 = vadd.xlane.f32.xlu0 %v1194_v63  ;;  %v874_v44 = vsub.f32 %v810_v41, %v2463_v59  ;;  %vm634_vm11 = vcmp.le.f32.partialorder %v321_v52, %v2342_v8  ;;  %v491_v2 = vand.u32 2147483647, %v427_v46  ;;  %vm555_vm12 = vcmp.le.f32.partialorder %v2347_v12, %v289_v39 }
  0x5a   :  { %v1197_v3 = vsel %vm1046_vm2, %v1032_v62, 0.0  ;;  %v969_v11 = vsel %vm713_vm8, %v777_v55, %v905_v0  ;;  %v762_v14 = vmul.f32 %v2456_v56, %v506_v31  ;;  %v826_v13 = vmul.f32 %v506_v31, %v2337_v6  ;;  %vm698_vm13 = vmand %vm570_vm9, %vm634_vm11 }
  0x5b   :  { %1198 = vadd.xlane.f32.xlu1 %v1197_v3  ;;  %v938_v26 = vsel %vm682_vm10, %v746_v61, %v874_v44  ;;  %v1033_v49 = vmul.f32 %v969_v11, %v969_v11  ;;  %vm619_vm14 = vcmp.le.f32.partialorder %v289_v39, %v2360_v16  ;;  %v747_v34 = vmul.f32 %v2481_v10, %v491_v2 }
  0x5c   :  { %v1002_v27 = vmul.f32 %v938_v26, %v938_v26  ;;  %v890_v23 = vsub.f32 %v826_v13, %v2463_v59  ;;  %v811_v43 = vmul.f32 %v491_v2, %v2386_v25  ;;  %v242_v29 = vcombine.high %v2745_v17, %v2745_v17  ;;  %vm683_vm15 = vmand %vm555_vm12, %vm619_vm14 }
  0x5d   :  { %v1200_v30 = vsel %vm1046_vm2, %v1033_v49, 0.0  ;;  %v443_v45 = vsub.f32 %v321_v52, %v2401_v32  ;;  %vm571_vm0 = vcmp.le.f32.partialorder %v2347_v12, %v321_v52  ;;  %vm635_vm1 = vcmp.le.f32.partialorder %v321_v52, %v2360_v16 }
  0x5e   :  { %v1107_v9 = vsel %vm1046_vm2, %v1002_v27, 0.0  ;;  %1201 = vadd.xlane.f32.xlu0 %v1200_v30  ;;  %v954_v36 = vsel %vm698_vm13, %v762_v14, %v890_v23  ;;  %v875_v5 = vsub.f32 %v811_v43, %v2493_v22  ;;  %v353_v33 = vrot.slane %v242_v29, %v2383_v24  ;;  %vm2882_vm5 = vmand %vm571_vm0, %vm635_vm1 }
  0x5f   :  { %1108 = vadd.xlane.f32.xlu1 %v1107_v9  ;;  %v1018_v17 = vmul.f32 %v954_v36, %v954_v36  ;;  %v507_v37 = vand.u32 2147483647, %v443_v45  ;;  %v146_v39 = vcombine.high %v2437_v47, %v2437_v47  ;;  %v195_v40 = vcombine.high %v2724_v1, %v2724_v1 }
  0x60   :  { %v939_v48 = vsel %vm683_vm15, %v747_v34, %v875_v5  ;;  %v458_v50 = vsub.f32 %v353_v33, %v2372_v19  ;;  %vm586_vm3 = vcmp.le.f32.partialorder %v2331_v4, %v353_v33  ;;  %vm650_vm4 = vcmp.le.f32.partialorder %v353_v33, %v2342_v8 }
  0x61   :  { %v1155_v51 = vsel %vm1046_vm2, %v1018_v17, 0.0  ;;  %v1003_v38 = vmul.f32 %v939_v48, %v939_v48  ;;  %v763_v53 = vmul.f32 %v2481_v10, %v507_v37  ;;  %v827_v35 = vmul.f32 %v507_v37, %v2386_v25  ;;  %vm714_vm9 = vmand %vm586_vm3, %vm650_vm4 }
  0x62   :  { %v522_v15 = vand.u32 2147483647, %v458_v50  ;;  %v293_v1 = vrot.slane %v146_v39, %v2383_v24  ;;  %v459_v46 = vsub.f32 %v353_v33, %v2401_v32  ;;  %vm587_vm6 = vcmp.le.f32.partialorder %v2347_v12, %v353_v33 }
  0x63   :  { %1156 = vadd.xlane.f32.xlu1 %v1155_v51  ;;  %v1110_v54 = vsel %vm1046_vm2, %v1003_v38, 0.0  ;;  %v891_v55 = vsub.f32 %v827_v35, %v2493_v22  ;;  %vm651_vm7 = vcmp.le.f32.partialorder %v353_v33, %v2360_v16  ;;  %v2893_v57 = vrot.slane %v195_v40, %v2383_v24  ;;  %v2957_v35 = vld [vmem:[%s4278_s1] sm:$0xff] }
  0x64   :  { %1111 = vadd.xlane.f32.xlu0 %v1110_v54  ;;  %v778_v52 = vmul.f32 %v2456_v56, %v522_v15  ;;  %v842_v58 = vmul.f32 %v522_v15, %v2337_v6  ;;  %v428_v60 = vsub.f32 %v293_v1, %v2372_v19  ;;  %vm556_vm8 = vcmp.le.f32.partialorder %v2331_v4, %v293_v1  ;;  %vm715_vm13 = vmand %vm587_vm6, %vm651_vm7 }
  0x65   :  { %v955_v61 = vsel %vm2882_vm5, %v763_v53, %v891_v55  ;;  %vm620_vm10 = vcmp.le.f32.partialorder %v293_v1, %v2342_v8  ;;  %v523_v41 = vand.u32 2147483647, %v459_v46  ;;  %v444_v62 = vsub.f32 %v2893_v57, %v2372_v19 }
  0x66   :  { %v906_v63 = vsub.f32 %v842_v58, %v2463_v59  ;;  %v1019_v0 = vmul.f32 %v955_v61, %v955_v61  ;;  %v492_v31 = vand.u32 2147483647, %v428_v60  ;;  %vm572_vm11 = vcmp.le.f32.partialorder %v2331_v4, %v2893_v57  ;;  %vm684_vm14 = vmand %vm556_vm8, %vm620_vm10 }
  0x67   :  { %v779_v44 = vmul.f32 %v2481_v10, %v523_v41  ;;  %v843_v2 = vmul.f32 %v523_v41, %v2386_v25  ;;  %v508_v3 = vand.u32 2147483647, %v444_v62  ;;  %vm636_vm12 = vcmp.le.f32.partialorder %v2893_v57, %v2342_v8 }
  0x68   :  { %v970_v11 = vsel %vm714_vm9, %v778_v52, %v906_v63  ;;  %v1158_v14 = vsel %vm1046_vm2, %v1019_v0, 0.0  ;;  %v748_v13 = vmul.f32 %v2456_v56, %v492_v31  ;;  %v812_v26 = vmul.f32 %v492_v31, %v2337_v6  ;;  %vm700_vm15 = vmand %vm572_vm11, %vm636_vm12  ;;  %v2971_v52 = vld [vmem:[%s4278_s1 + $0x8] sm:$0xff] }
  0x69   :  { %v1034_v49 = vmul.f32 %v970_v11, %v970_v11  ;;  %1159 = vadd.xlane.f32.xlu0 %v1158_v14  ;;  %v907_v34 = vsub.f32 %v843_v2, %v2493_v22  ;;  %v764_v27 = vmul.f32 %v2456_v56, %v508_v3  ;;  %v828_v23 = vmul.f32 %v508_v3, %v2337_v6  ;;  %v2298_v2 = vld [vmem:[%s4280_s0 + $0x10] sm:$0xff] }
  0x6a   :  { %v876_v43 = vsub.f32 %v812_v26, %v2463_v59  ;;  %v429_v29 = vsub.f32 %v293_v1, %v2401_v32  ;;  %vm557_vm0 = vcmp.le.f32.partialorder %v2347_v12, %v293_v1  ;;  %vm621_vm1 = vcmp.le.f32.partialorder %v293_v1, %v2360_v16 }
  0x6b   :  { %v1203_v30 = vsel %vm1046_vm2, %v1034_v49, 0.0  ;;  %v971_v45 = vsel %vm715_vm13, %v779_v44, %v907_v34  ;;  %v892_v9 = vsub.f32 %v828_v23, %v2463_v59  ;;  %v244_v36 = vcombine.high %v2782_v42, %v2782_v42  ;;  %vm685_vm4 = vmand %vm557_vm0, %vm621_vm1 }
  0x6c   :  { %1204 = vadd.xlane.f32.xlu1 %v1203_v30  ;;  %v940_v5 = vsel %vm684_vm14, %v748_v13, %v876_v43  ;;  %v1035_v33 = vmul.f32 %v971_v45, %v971_v45  ;;  %v493_v17 = vand.u32 2147483647, %v429_v29  ;;  %v445_v4 = vsub.f32 %v2893_v57, %v2401_v32 }
  0x6d   :  { %v1004_v37 = vmul.f32 %v940_v5, %v940_v5  ;;  %v956_v39 = vsel %vm700_vm15, %v764_v27, %v892_v9  ;;  %v357_v40 = vrot.slane %v244_v36, %v2383_v24  ;;  %vm573_vm3 = vcmp.le.f32.partialorder %v2347_v12, %v2893_v57 }
  0x6e   :  { %v1206_v48 = vsel %vm1046_vm2, %v1035_v33, 0.0  ;;  %v1020_v50 = vmul.f32 %v956_v39, %v956_v39  ;;  %v749_v51 = vmul.f32 %v2481_v10, %v493_v17  ;;  %v813_v42 = vmul.f32 %v493_v17, %v2386_v25 }
  0x6f   :  { %v1113_v38 = vsel %vm1046_vm2, %v1004_v37, 0.0  ;;  %1207 = vadd.xlane.f32.xlu0 %v1206_v48  ;;  %v460_v53 = vsub.f32 %v357_v40, %v2372_v19  ;;  %vm588_vm5 = vcmp.le.f32.partialorder %v2957_v35, %v357_v40  ;;  %vm652_vm6 = vcmp.le.f32.partialorder %v357_v40, %v2342_v8 }
  0x70   :  { %1114 = vadd.xlane.f32.xlu1 %v1113_v38  ;;  %v1161_v15 = vsel %vm1046_vm2, %v1020_v50, 0.0  ;;  %v877_v47 = vsub.f32 %v813_v42, %v2493_v22  ;;  %v509_v46 = vand.u32 2147483647, %v445_v4  ;;  %vm637_vm7 = vcmp.le.f32.partialorder %v2893_v57, %v2360_v16  ;;  %vm2987_vm11 = vmand %vm588_vm5, %vm652_vm6  ;;  %v2299_v57 = vld [vmem:[%s4280_s0 + $0x18] sm:$0xff] }
  0x71   :  { %v524_v1 = vand.u32 2147483647, %v460_v53  ;;  %v99_v54 = vcombine.high %v2368_v18, %v2368_v18  ;;  %v461_v55 = vsub.f32 %v357_v40, %v2401_v32  ;;  %vm589_vm8 = vcmp.le.f32.partialorder %v2971_v52, %v357_v40  ;;  %vm701_vm10 = vmand %vm573_vm3, %vm637_vm7 }
  0x72   :  { %v941_v58 = vsel %vm685_vm4, %v749_v51, %v877_v47  ;;  %v765_v60 = vmul.f32 %v2481_v10, %v509_v46  ;;  %v829_v61 = vmul.f32 %v509_v46, %v2386_v25  ;;  %vm653_vm9 = vcmp.le.f32.partialorder %v357_v40, %v2360_v16 }
  0x73   :  { %v1005_v41 = vmul.f32 %v941_v58, %v941_v58  ;;  %v780_v62 = vmul.f32 %v2456_v56, %v524_v1  ;;  %v844_v18 = vmul.f32 %v524_v1, %v2337_v6  ;;  %v113_v63 = vrot.slane %v99_v54, %v2374_v20  ;;  %vm717_vm12 = vmand %vm589_vm8, %vm653_vm9 }
  0x74   :  { %1162 = vadd.xlane.f32.xlu1 %v1161_v15  ;;  %v893_v31 = vsub.f32 %v829_v61, %v2493_v22  ;;  %v525_v44 = vand.u32 2147483647, %v461_v55  ;;  %v148_v12 = vcombine.high %v2298_v2, %v2298_v2  ;;  %v197_v3 = vcombine.high %v2299_v57, %v2299_v57 }
  0x75   :  { %v1116_v11 = vsel %vm1046_vm2, %v1005_v41, 0.0  ;;  %v908_v14 = vsub.f32 %v844_v18, %v2463_v59  ;;  %v3001_v13 = vrot.slane %v113_v63, %v2374_v20  ;;  %v115_v26 = vcombine.high %v113_v63, %v113_v63 }
  0x76   :  { %1117 = vadd.xlane.f32.xlu0 %v1116_v11  ;;  %v957_v49 = vsel %vm701_vm10, %v765_v60, %v893_v31  ;;  %v781_v34 = vmul.f32 %v2481_v10, %v525_v44  ;;  %v845_v27 = vmul.f32 %v525_v44, %v2386_v25  ;;  %v3006_v23 = vrot.slane %v148_v12, %v2374_v20 }
  0x77   :  { %v972_v43 = vsel %vm2987_vm11, %v780_v62, %v908_v14  ;;  %v1021_v29 = vmul.f32 %v957_v49, %v957_v49  ;;  %v297_v30 = vrot.slane %v3001_v13, %v2383_v24  ;;  %v3017_v45 = vrot.slane %v197_v3, %v2374_v20 }
  0x78   :  { %v1036_v9 = vmul.f32 %v972_v43, %v972_v43  ;;  %v909_v36 = vsub.f32 %v845_v27, %v2493_v22  ;;  %v3022_v5 = vrot.slane %v3006_v23, %v2374_v20  ;;  %v3025_v33 = vrot.slane %v115_v26, %v2374_v20 }
  0x79   :  { %v1164_v17 = vsel %vm1046_vm2, %v1021_v29, 0.0  ;;  %v430_v4 = vsub.f32 %v297_v30, %v2372_v19  ;;  %vm558_vm13 = vcmp.le.f32.partialorder %v2957_v35, %v297_v30  ;;  %vm622_vm14 = vcmp.le.f32.partialorder %v297_v30, %v2342_v8 }
  0x7a   :  { %v1209_v37 = vsel %vm1046_vm2, %v1036_v9, 0.0  ;;  %1165 = vadd.xlane.f32.xlu0 %v1164_v17  ;;  %v973_v39 = vsel %vm717_vm12, %v781_v34, %v909_v36  ;;  %v329_v40 = vrot.slane %v3022_v5, %v2383_v24  ;;  %v431_v48 = vsub.f32 %v297_v30, %v2401_v32  ;;  %vm686_vm4 = vmand %vm558_vm13, %vm622_vm14 }
  0x7b   :  { %1210 = vadd.xlane.f32.xlu1 %v1209_v37  ;;  %v494_v50 = vand.u32 2147483647, %v430_v4  ;;  %v1037_v51 = vmul.f32 %v973_v39, %v973_v39  ;;  %vm559_vm15 = vcmp.le.f32.partialorder %v2971_v52, %v297_v30  ;;  %vm623_vm0 = vcmp.le.f32.partialorder %v297_v30, %v2360_v16 }
  0x7c   :  { %v446_v42 = vsub.f32 %v329_v40, %v2372_v19  ;;  %vm574_vm1 = vcmp.le.f32.partialorder %v2957_v35, %v329_v40  ;;  %vm638_vm3 = vcmp.le.f32.partialorder %v329_v40, %v2342_v8  ;;  %v495_v38 = vand.u32 2147483647, %v431_v48  ;;  %vm687_vm5 = vmand %vm559_vm15, %vm623_vm0 }
  0x7d   :  { %v750_v53 = vmul.f32 %v2456_v56, %v494_v50  ;;  %v814_v15 = vmul.f32 %v494_v50, %v2337_v6  ;;  %v1212_v47 = vsel %vm1046_vm2, %v1037_v51, 0.0  ;;  %v3045_v46 = vrot.slane %v3017_v45, %v2374_v20  ;;  %vm702_vm8 = vmand %vm574_vm1, %vm638_vm3 }
  0x7e   :  { %1213 = vadd.xlane.f32.xlu0 %v1212_v47  ;;  %v510_v1 = vand.u32 2147483647, %v446_v42  ;;  %v751_v54 = vmul.f32 %v2481_v10, %v495_v38  ;;  %v815_v55 = vmul.f32 %v495_v38, %v2386_v25  ;;  %v447_v58 = vsub.f32 %v329_v40, %v2401_v32 }
  0x7f   :  { %v878_v60 = vsub.f32 %v814_v15, %v2463_v59  ;;  %v361_v61 = vrot.slane %v3045_v46, %v2383_v24  ;;  %vm575_vm6 = vcmp.le.f32.partialorder %v2971_v52, %v329_v40  ;;  %vm639_vm7 = vcmp.le.f32.partialorder %v329_v40, %v2360_v16 }
  0x80   :  { %v766_v41 = vmul.f32 %v2456_v56, %v510_v1  ;;  %v830_v62 = vmul.f32 %v510_v1, %v2337_v6  ;;  %v879_v18 = vsub.f32 %v815_v55, %v2493_v22  ;;  %v511_v63 = vand.u32 2147483647, %v447_v58  ;;  %vm703_vm12 = vmand %vm575_vm6, %vm639_vm7 }
  0x81   :  { %v942_v0 = vsel %vm686_vm4, %v750_v53, %v878_v60  ;;  %v462_v31 = vsub.f32 %v361_v61, %v2372_v19  ;;  %vm590_vm9 = vcmp.le.f32.partialorder %v2957_v35, %v361_v61  ;;  %vm654_vm10 = vcmp.le.f32.partialorder %v361_v61, %v2342_v8 }
  0x82   :  { %v1006_v44 = vmul.f32 %v942_v0, %v942_v0  ;;  %v894_v2 = vsub.f32 %v830_v62, %v2463_v59  ;;  %v943_v12 = vsel %vm687_vm5, %v751_v54, %v879_v18  ;;  %v767_v57 = vmul.f32 %v2481_v10, %v511_v63  ;;  %vm718_vm13 = vmand %vm590_vm9, %vm654_vm10 }
  0x83   :  { %v1007_v3 = vmul.f32 %v943_v12, %v943_v12  ;;  %v526_v11 = vand.u32 2147483647, %v462_v31  ;;  %v831_v14 = vmul.f32 %v511_v63, %v2386_v25  ;;  %v301_v26 = vrot.slane %v3025_v33, %v2383_v24 }
  0x84   :  { %v1119_v49 = vsel %vm1046_vm2, %v1006_v44, 0.0  ;;  %v958_v34 = vsel %vm702_vm8, %v766_v41, %v894_v2  ;;  %v463_v27 = vsub.f32 %v361_v61, %v2401_v32  ;;  %vm591_vm11 = vcmp.le.f32.partialorder %v2971_v52, %v361_v61 }
  0x85   :  { %1120 = vadd.xlane.f32.xlu1 %v1119_v49  ;;  %v1022_v43 = vmul.f32 %v958_v34, %v958_v34  ;;  %v1122_v29 = vsel %vm1046_vm2, %v1007_v3, 0.0  ;;  %v782_v30 = vmul.f32 %v2456_v56, %v526_v11  ;;  %v846_v9 = vmul.f32 %v526_v11, %v2337_v6 }
  0x86   :  { %1123 = vadd.xlane.f32.xlu0 %v1122_v29  ;;  %v895_v36 = vsub.f32 %v831_v14, %v2493_v22  ;;  %v432_v17 = vsub.f32 %v301_v26, %v2372_v19  ;;  %vm560_vm14 = vcmp.le.f32.partialorder %v2957_v35, %v301_v26  ;;  %vm624_vm15 = vcmp.le.f32.partialorder %v301_v26, %v2342_v8 }
  0x87   :  { %v1167_v4 = vsel %vm1046_vm2, %v1022_v43, 0.0  ;;  %v910_v37 = vsub.f32 %v846_v9, %v2463_v59  ;;  %v527_v39 = vand.u32 2147483647, %v463_v27  ;;  %vm655_vm0 = vcmp.le.f32.partialorder %v361_v61, %v2360_v16  ;;  %vm688_vm3 = vmand %vm560_vm14, %vm624_vm15 }
  0x88   :  { %v959_v40 = vsel %vm703_vm12, %v767_v57, %v895_v36  ;;  %v496_v48 = vand.u32 2147483647, %v432_v17  ;;  %v164_v50 = vcombine.high %v3006_v23, %v3006_v23  ;;  %v433_v51 = vsub.f32 %v301_v26, %v2401_v32  ;;  %vm719_vm1 = vmand %vm591_vm11, %vm655_vm0 }
  0x89   :  { %1168 = vadd.xlane.f32.xlu1 %v1167_v4  ;;  %v974_v42 = vsel %vm718_vm13, %v782_v30, %v910_v37  ;;  %v1023_v38 = vmul.f32 %v959_v40, %v959_v40  ;;  %v783_v53 = vmul.f32 %v2481_v10, %v527_v39  ;;  %v847_v15 = vmul.f32 %v527_v39, %v2386_v25 }
  0x8a   :  { %v1038_v47 = vmul.f32 %v974_v42, %v974_v42  ;;  %v752_v1 = vmul.f32 %v2456_v56, %v496_v48  ;;  %v816_v54 = vmul.f32 %v496_v48, %v2337_v6  ;;  %v3109_v55 = vrot.slane %v164_v50, %v2374_v20 }
  0x8b   :  { %v1170_v23 = vsel %vm1046_vm2, %v1023_v38, 0.0  ;;  %v911_v58 = vsub.f32 %v847_v15, %v2493_v22  ;;  %v497_v60 = vand.u32 2147483647, %v433_v51  ;;  %vm561_vm4 = vcmp.le.f32.partialorder %v2971_v52, %v301_v26 }
  0x8c   :  { %v1215_v41 = vsel %vm1046_vm2, %v1038_v47, 0.0  ;;  %1171 = vadd.xlane.f32.xlu0 %v1170_v23  ;;  %v880_v61 = vsub.f32 %v816_v54, %v2463_v59  ;;  %v333_v62 = vrot.slane %v3109_v55, %v2383_v24  ;;  %vm625_vm5 = vcmp.le.f32.partialorder %v301_v26, %v2360_v16 }
  0x8d   :  { %1216 = vadd.xlane.f32.xlu1 %v1215_v41  ;;  %v975_v18 = vsel %vm719_vm1, %v783_v53, %v911_v58  ;;  %v753_v63 = vmul.f32 %v2481_v10, %v497_v60  ;;  %v817_v0 = vmul.f32 %v497_v60, %v2386_v25  ;;  %v213_v31 = vcombine.high %v3017_v45, %v3017_v45  ;;  %vm689_vm7 = vmand %vm561_vm4, %vm625_vm5 }
  0x8e   :  { %v944_v44 = vsel %vm688_vm3, %v752_v1, %v880_v61  ;;  %v1039_v2 = vmul.f32 %v975_v18, %v975_v18  ;;  %v448_v12 = vsub.f32 %v333_v62, %v2372_v19  ;;  %vm576_vm6 = vcmp.le.f32.partialorder %v2957_v35, %v333_v62 }
  0x8f   :  { %v1008_v57 = vmul.f32 %v944_v44, %v944_v44  ;;  %vm640_vm8 = vcmp.le.f32.partialorder %v333_v62, %v2342_v8  ;;  %v881_v3 = vsub.f32 %v817_v0, %v2493_v22  ;;  %v3134_v11 = vrot.slane %v213_v31, %v2374_v20 }
  0x90   :  { %v1218_v14 = vsel %vm1046_vm2, %v1039_v2, 0.0  ;;  %v512_v45 = vand.u32 2147483647, %v448_v12  ;;  %v449_v49 = vsub.f32 %v333_v62, %v2401_v32  ;;  %vm577_vm9 = vcmp.le.f32.partialorder %v2971_v52, %v333_v62  ;;  %vm704_vm11 = vmand %vm576_vm6, %vm640_vm8 }
  0x91   :  { %v1125_v34 = vsel %vm1046_vm2, %v1008_v57, 0.0  ;;  %1219 = vadd.xlane.f32.xlu0 %v1218_v14  ;;  %v945_v26 = vsel %vm689_vm7, %v753_v63, %v881_v3  ;;  %v365_v27 = vrot.slane %v3134_v11, %v2383_v24  ;;  %vm641_vm10 = vcmp.le.f32.partialorder %v333_v62, %v2360_v16 }
  0x92   :  { %1126 = vadd.xlane.f32.xlu1 %v1125_v34  ;;  %v768_v20 = vmul.f32 %v2456_v56, %v512_v45  ;;  %v832_v43 = vmul.f32 %v512_v45, %v2337_v6  ;;  %v1009_v29 = vmul.f32 %v945_v26, %v945_v26  ;;  %v513_v30 = vand.u32 2147483647, %v449_v49  ;;  %vm705_vm14 = vmand %vm577_vm9, %vm641_vm10 }
  0x93   :  { %v464_v9 = vsub.f32 %v365_v27, %v2372_v19  ;;  %vm592_vm12 = vcmp.le.f32.partialorder %v2957_v35, %v365_v27  ;;  %vm656_vm13 = vcmp.le.f32.partialorder %v365_v27, %v2342_v8  ;;  %v145_v36 = vcombine.high %v3001_v13, %v3001_v13 }
  0x94   :  { %v896_v17 = vsub.f32 %v832_v43, %v2463_v59  ;;  %v1128_v4 = vsel %vm1046_vm2, %v1009_v29, 0.0  ;;  %v769_v37 = vmul.f32 %v2481_v10, %v513_v30  ;;  %v833_v39 = vmul.f32 %v513_v30, %v2386_v25  ;;  %vm720_vm1 = vmand %vm592_vm12, %vm656_vm13 }
  0x95   :  { %1129 = vadd.xlane.f32.xlu0 %v1128_v4  ;;  %v528_v40 = vand.u32 2147483647, %v464_v9  ;;  %v305_v48 = vrot.slane %v145_v36, %v2383_v24  ;;  %v465_v50 = vsub.f32 %v365_v27, %v2401_v32  ;;  %vm593_vm15 = vcmp.le.f32.partialorder %v2971_v52, %v365_v27 }
  0x96   :  { %v960_v13 = vsel %vm704_vm11, %v768_v20, %v896_v17  ;;  %v897_v51 = vsub.f32 %v833_v39, %v2493_v22  ;;  %vm657_vm0 = vcmp.le.f32.partialorder %v365_v27, %v2360_v16  ;;  %v194_v42 = vcombine.high %v3022_v5, %v3022_v5 }
  0x97   :  { %v1024_v38 = vmul.f32 %v960_v13, %v960_v13  ;;  %v784_v53 = vmul.f32 %v2456_v56, %v528_v40  ;;  %v848_v15 = vmul.f32 %v528_v40, %v2337_v6  ;;  %v434_v47 = vsub.f32 %v305_v48, %v2372_v19  ;;  %vm721_vm5 = vmand %vm593_vm15, %vm657_vm0 }
  0x98   :  { %v961_v1 = vsel %vm705_vm14, %v769_v37, %v897_v51  ;;  %vm562_vm3 = vcmp.le.f32.partialorder %v2957_v35, %v305_v48  ;;  %vm626_vm4 = vcmp.le.f32.partialorder %v305_v48, %v2342_v8  ;;  %v529_v54 = vand.u32 2147483647, %v465_v50 }
  0x99   :  { %v1173_v5 = vsel %vm1046_vm2, %v1024_v38, 0.0  ;;  %v912_v23 = vsub.f32 %v848_v15, %v2463_v59  ;;  %v1025_v58 = vmul.f32 %v961_v1, %v961_v1  ;;  %v498_v60 = vand.u32 2147483647, %v434_v47  ;;  %vm690_vm6 = vmand %vm562_vm3, %vm626_vm4 }
  0x9a   :  { %1174 = vadd.xlane.f32.xlu1 %v1173_v5  ;;  %v785_v41 = vmul.f32 %v2481_v10, %v529_v54  ;;  %v849_v61 = vmul.f32 %v529_v54, %v2386_v25  ;;  %v337_v62 = vrot.slane %v194_v42, %v2383_v24  ;;  %v435_v18 = vsub.f32 %v305_v48, %v2401_v32 }
  0x9b   :  { %v976_v63 = vsel %vm720_vm1, %v784_v53, %v912_v23  ;;  %v1176_v0 = vsel %vm1046_vm2, %v1025_v58, 0.0  ;;  %v754_v31 = vmul.f32 %v2456_v56, %v498_v60  ;;  %v818_v44 = vmul.f32 %v498_v60, %v2337_v6 }
  0x9c   :  { %v1040_v2 = vmul.f32 %v976_v63, %v976_v63  ;;  %1177 = vadd.xlane.f32.xlu0 %v1176_v0  ;;  %v913_v12 = vsub.f32 %v849_v61, %v2493_v22  ;;  %v450_v57 = vsub.f32 %v337_v62, %v2372_v19  ;;  %vm578_vm7 = vcmp.le.f32.partialorder %v2957_v35, %v337_v62 }
  0x9d   :  { %v882_v3 = vsub.f32 %v818_v44, %v2463_v59  ;;  %vm642_vm8 = vcmp.le.f32.partialorder %v337_v62, %v2342_v8  ;;  %v499_v14 = vand.u32 2147483647, %v435_v18  ;;  %vm563_vm9 = vcmp.le.f32.partialorder %v2971_v52, %v305_v48 }
  0x9e   :  { %v1221_v45 = vsel %vm1046_vm2, %v1040_v2, 0.0  ;;  %v977_v49 = vsel %vm721_vm5, %v785_v41, %v913_v12  ;;  %v514_v34 = vand.u32 2147483647, %v450_v57  ;;  %vm627_vm10 = vcmp.le.f32.partialorder %v305_v48, %v2360_v16  ;;  %vm706_vm12 = vmand %vm578_vm7, %vm642_vm8 }
  0x9f   :  { %1222 = vadd.xlane.f32.xlu1 %v1221_v45  ;;  %v946_v26 = vsel %vm690_vm6, %v754_v31, %v882_v3  ;;  %v1041_v27 = vmul.f32 %v977_v49, %v977_v49  ;;  %v755_v20 = vmul.f32 %v2481_v10, %v499_v14  ;;  %v819_v43 = vmul.f32 %v499_v14, %v2386_v25  ;;  %vm691_vm11 = vmand %vm563_vm9, %vm627_vm10 }
  0xa0   :  { %v1010_v29 = vmul.f32 %v946_v26, %v946_v26  ;;  %v770_v30 = vmul.f32 %v2456_v56, %v514_v34  ;;  %v834_v9 = vmul.f32 %v514_v34, %v2337_v6  ;;  %v243_v36 = vcombine.high %v3045_v46, %v3045_v46 }
  0xa1   :  { %v1224_v17 = vsel %vm1046_vm2, %v1041_v27, 0.0  ;;  %v883_v4 = vsub.f32 %v819_v43, %v2493_v22  ;;  %v451_v37 = vsub.f32 %v337_v62, %v2401_v32  ;;  %vm579_vm13 = vcmp.le.f32.partialorder %v2971_v52, %v337_v62 }
  0xa2   :  { %v1131_v39 = vsel %vm1046_vm2, %v1010_v29, 0.0  ;;  %1225 = vadd.xlane.f32.xlu0 %v1224_v17  ;;  %v898_v40 = vsub.f32 %v834_v9, %v2463_v59  ;;  %v369_v46 = vrot.slane %v243_v36, %v2383_v24  ;;  %vm643_vm14 = vcmp.le.f32.partialorder %v337_v62, %v2360_v16 }
  0xa3   :  { %1132 = vadd.xlane.f32.xlu1 %v1131_v39  ;;  %v947_v48 = vsel %vm691_vm11, %v755_v20, %v883_v4  ;;  %v515_v50 = vand.u32 2147483647, %v451_v37  ;;  %v421_v13 = vsub.f32 %v2599_v7, %v2401_v32  ;;  %vm549_vm15 = vcmp.le.f32.partialorder %v2971_v52, %v2599_v7  ;;  %vm707_vm3 = vmand %vm579_vm13, %vm643_vm14 }
  0xa4   :  { %v962_v51 = vsel %vm706_vm12, %v770_v30, %v898_v40  ;;  %v1011_v42 = vmul.f32 %v947_v48, %v947_v48  ;;  %v466_v38 = vsub.f32 %v369_v46, %v2372_v19  ;;  %vm594_vm0 = vcmp.le.f32.partialorder %v2957_v35, %v369_v46 }
  0xa5   :  { %v1026_v53 = vmul.f32 %v962_v51, %v962_v51  ;;  %vm658_vm1 = vcmp.le.f32.partialorder %v369_v46, %v2342_v8  ;;  %v771_v15 = vmul.f32 %v2481_v10, %v515_v50  ;;  %v835_v47 = vmul.f32 %v515_v50, %v2386_v25 }
  0xa6   :  { %v1134_v1 = vsel %vm1046_vm2, %v1011_v42, 0.0  ;;  %v530_v54 = vand.u32 2147483647, %v466_v38  ;;  %v485_v5 = vand.u32 2147483647, %v421_v13  ;;  %vm613_vm4 = vcmp.le.f32.partialorder %v2599_v7, %v2360_v16  ;;  %v3237_v23 = vpop.xlane.xlu0 %1048  ;;  %vm3247_vm6 = vmand %vm594_vm0, %vm658_vm1 }
  0xa7   :  { %v1179_v58 = vsel %vm1046_vm2, %v1026_v53, 0.0  ;;  %1135 = vadd.xlane.f32.xlu0 %v1134_v1  ;;  %v899_v60 = vsub.f32 %v835_v47, %v2493_v22  ;;  %v467_v41 = vsub.f32 %v369_v46, %v2401_v32  ;;  %vm595_vm5 = vcmp.le.f32.partialorder %v2971_v52, %v369_v46  ;;  %vm677_vm7 = vmand %vm549_vm15, %vm613_vm4 }
  0xa8   :  { %1180 = vadd.xlane.f32.xlu1 %v1179_v58  ;;  %v786_v62 = vmul.f32 %v2456_v56, %v530_v54  ;;  %v850_v18 = vmul.f32 %v530_v54, %v2337_v6  ;;  %v741_v63 = vmul.f32 %v2481_v10, %v485_v5  ;;  %v805_v0 = vmul.f32 %v485_v5, %v2386_v25 }
  0xa9   :  { %v963_v31 = vsel %vm707_vm3, %v771_v15, %v899_v60  ;;  %v531_v44 = vand.u32 2147483647, %v467_v41  ;;  %vm659_vm8 = vcmp.le.f32.partialorder %v369_v46, %v2360_v16  ;;  %v147_v2 = vcombine.high %v3025_v33, %v3025_v33 }
  0xaa   :  { %v914_v12 = vsub.f32 %v850_v18, %v2463_v59  ;;  %v1027_v57 = vmul.f32 %v963_v31, %v963_v31  ;;  %v869_v3 = vsub.f32 %v805_v0, %v2493_v22  ;;  %v196_v14 = vcombine.high %v3109_v55, %v3109_v55  ;;  %v3265_v45 = vpop.xlane.xlu1 %1075  ;;  %vm723_vm9 = vmand %vm595_vm5, %vm659_vm8  ;;  %v3278_v43 = vpop.xlane.xlu0 %1051 }
  0xab   :  { %v787_v49 = vmul.f32 %v2481_v10, %v531_v44  ;;  %v851_v7 = vmul.f32 %v531_v44, %v2386_v25  ;;  %v309_v34 = vrot.slane %v147_v2, %v2383_v24  ;;  %v245_v26 = vcombine.high %v3134_v11, %v3134_v11 }
  0xac   :  { %v978_v33 = vsel %vm3247_vm6, %v786_v62, %v914_v12  ;;  %v1182_v27 = vsel %vm1046_vm2, %v1027_v57, 0.0  ;;  %v933_v20 = vsel %vm677_vm7, %v741_v63, %v869_v3  ;;  %v341_v55 = vrot.slane %v196_v14, %v2383_v24 }
  0xad   :  { %v1042_v29 = vmul.f32 %v978_v33, %v978_v33  ;;  %1183 = vadd.xlane.f32.xlu0 %v1182_v27  ;;  %v997_v30 = vmul.f32 %v933_v20, %v933_v20  ;;  %v915_v9 = vsub.f32 %v851_v7, %v2493_v22  ;;  %v437_v11 = vsub.f32 %v309_v34, %v2401_v32 }
  0xae   :  { %vm565_vm10 = vcmp.le.f32.partialorder %v2971_v52, %v309_v34  ;;  %vm629_vm11 = vcmp.le.f32.partialorder %v309_v34, %v2360_v16  ;;  %v436_v36 = vsub.f32 %v309_v34, %v2372_v19  ;;  %vm564_vm12 = vcmp.le.f32.partialorder %v2957_v35, %v309_v34  ;;  %v3286_v17 = vpop.xlane.xlu1 %1096 }
  0xaf   :  { %v1227_v4 = vsel %vm1046_vm2, %v1042_v29, 0.0  ;;  %v1092_v37 = vsel %vm1046_vm2, %v997_v30, 0.0  ;;  %v979_v39 = vsel %vm723_vm9, %v787_v49, %v915_v9  ;;  %v501_v40 = vand.u32 2147483647, %v437_v11  ;;  %vm3301_vm0 = vmand %vm565_vm10, %vm629_vm11 }
  0xb0   :  { %1228 = vadd.xlane.f32.xlu1 %v1227_v4  ;;  %v1043_v46 = vmul.f32 %v979_v39, %v979_v39  ;;  %v500_v48 = vand.u32 2147483647, %v436_v36  ;;  %vm628_vm13 = vcmp.le.f32.partialorder %v309_v34, %v2342_v8  ;;  %v453_v50 = vsub.f32 %v341_v55, %v2401_v32  ;;  %v3309_v54 = vpop.xlane.xlu0 %1072 }
  0xb1   :  { %v757_v13 = vmul.f32 %v2481_v10, %v501_v40  ;;  %v821_v51 = vmul.f32 %v501_v40, %v2386_v25  ;;  %vm581_vm14 = vcmp.le.f32.partialorder %v2971_v52, %v341_v55  ;;  %vm645_vm15 = vcmp.le.f32.partialorder %v341_v55, %v2360_v16  ;;  %vm692_vm1 = vmand %vm564_vm12, %vm628_vm13 }
  0xb2   :  { %v1230_v42 = vsel %vm1046_vm2, %v1043_v46, 0.0  ;;  %v756_v53 = vmul.f32 %v2456_v56, %v500_v48  ;;  %v820_v15 = vmul.f32 %v500_v48, %v2337_v6  ;;  %v517_v47 = vand.u32 2147483647, %v453_v50  ;;  %v3307_v1 = vpop.xlane.xlu1 %1054  ;;  %vm709_vm4 = vmand %vm581_vm14, %vm645_vm15 }
  0xb3   :  { %1231 = vadd.xlane.f32.xlu0 %v1230_v42  ;;  %v885_v5 = vsub.f32 %v821_v51, %v2493_v22  ;;  %v452_v58 = vsub.f32 %v341_v55, %v2372_v19  ;;  %vm580_vm3 = vcmp.le.f32.partialorder %v2957_v35, %v341_v55  ;;  %v373_v62 = vrot.slane %v245_v26, %v2383_v24 }
  0xb4   :  { %1093 = vadd.xlane.f32.xlu1 %v1092_v37  ;;  %v884_v60 = vsub.f32 %v820_v15, %v2463_v59  ;;  %v773_v41 = vmul.f32 %v2481_v10, %v517_v47  ;;  %v837_v61 = vmul.f32 %v517_v47, %v2386_v25  ;;  %vm644_vm5 = vcmp.le.f32.partialorder %v341_v55, %v2342_v8 }
  0xb5   :  { %v949_v18 = vsel %vm3301_vm0, %v757_v13, %v885_v5  ;;  %v516_v63 = vand.u32 2147483647, %v452_v58  ;;  %2168 = vrsqrt.f32 %v3237_v23  ;;  %v469_v2 = vsub.f32 %v373_v62, %v2401_v32  ;;  %vm708_vm7 = vmand %vm580_vm3, %vm644_vm5 }
  0xb6   :  { %v1013_v0 = vmul.f32 %v949_v18, %v949_v18  ;;  %v948_v31 = vsel %vm692_vm1, %v756_v53, %v884_v60  ;;  %v901_v44 = vsub.f32 %v837_v61, %v2493_v22  ;;  %v3332_v24 = vpop.xlane.xlu1 %1057  ;;  %vm597_vm6 = vcmp.le.f32.partialorder %v2971_v52, %v373_v62 }
  0xb7   :  { %v1012_v12 = vmul.f32 %v948_v31, %v948_v31  ;;  %v772_v57 = vmul.f32 %v2456_v56, %v516_v63  ;;  %v836_v3 = vmul.f32 %v516_v63, %v2337_v6  ;;  %v533_v7 = vand.u32 2147483647, %v469_v2  ;;  %v3341_v34 = vpop.xlane.xlu0 %1060 }
  0xb8   :  { %v1140_v14 = vsel %vm1046_vm2, %v1013_v0, 0.0  ;;  %v965_v49 = vsel %vm709_vm4, %v773_v41, %v901_v44  ;;  %vm661_vm8 = vcmp.le.f32.partialorder %v373_v62, %v2360_v16  ;;  %v468_v27 = vsub.f32 %v373_v62, %v2372_v19 }
  0xb9   :  { %1141 = vadd.xlane.f32.xlu1 %v1140_v14  ;;  %v1137_v32 = vsel %vm1046_vm2, %v1012_v12, 0.0  ;;  %v1029_v26 = vmul.f32 %v965_v49, %v965_v49  ;;  %v900_v33 = vsub.f32 %v836_v3, %v2463_v59  ;;  %v789_v20 = vmul.f32 %v2481_v10, %v533_v7  ;;  %vm725_vm10 = vmand %vm597_vm6, %vm661_vm8 }
  0xba   :  { %1138 = vadd.xlane.f32.xlu0 %v1137_v32  ;;  %v853_v29 = vmul.f32 %v533_v7, %v2386_v25  ;;  %vm596_vm9 = vcmp.le.f32.partialorder %v2957_v35, %v373_v62  ;;  %v3349_v55 = vpop.xlane.xlu1 %1063  ;;  %v532_v9 = vand.u32 2147483647, %v468_v27  ;;  %vm660_vm11 = vcmp.le.f32.partialorder %v373_v62, %v2342_v8 }
  0xbb   :  { %v1188_v16 = vsel %vm1046_vm2, %v1029_v26, 0.0  ;;  %v964_v30 = vsel %vm708_vm7, %v772_v57, %v900_v33  ;;  %2170 = vrsqrt.f32 %v3265_v45  ;;  %vm724_vm12 = vmand %vm596_vm9, %vm660_vm11  ;;  %vm1241_vm13 = vcmp.eq.f32.partialorder %v3237_v23, inf }
  0xbc   :  { %v1028_v11 = vmul.f32 %v964_v30, %v964_v30  ;;  %v917_v19 = vsub.f32 %v853_v29, %v2493_v22  ;;  %v788_v25 = vmul.f32 %v2456_v56, %v532_v9  ;;  %v852_v10 = vmul.f32 %v532_v9, %v2337_v6 }
  0xbd   :  { %1189 = vadd.xlane.f32.xlu1 %v1188_v16  ;;  %2172 = vrsqrt.f32 %v3278_v43  ;;  %v1244_v35 = vand.u32 2147483648, %v3237_v23  ;;  %vm1243_vm14 = vcmp.eq.f32.partialorder %v3237_v23, 0.0  ;;  %vm1304_vm15 = vcmp.eq.f32.partialorder %v3265_v45, inf }
  0xbe   :  { %v1185_v36 = vsel %vm1046_vm2, %v1028_v11, 0.0  ;;  %v981_v4 = vsel %vm725_vm10, %v789_v20, %v917_v19  ;;  %v3362_v52 = vpop.xlane.xlu0 %1078  ;;  %v916_v22 = vsub.f32 %v852_v10, %v2463_v59  ;;  %2174 = vrsqrt.f32 %v3286_v17 }
  0xbf   :  { %v2169_v37 = vpop.eup %2168  ;;  %1186 = vadd.xlane.f32.xlu0 %v1185_v36  ;;  %v1045_v8 = vmul.f32 %v981_v4, %v981_v4  ;;  %v3366_v39 = vpop.xlane.xlu1 %1081  ;;  %2176 = vrsqrt.f32 %v3307_v1  ;;  %vm1306_vm0 = vcmp.eq.f32.partialorder %v3265_v45, 0.0  ;;  %v1307_v42 = vand.u32 2147483648, %v3265_v45 }
  0xc0   :  { %v1240_v56 = vmul.f32 %v2169_v37, %v3237_v23  ;;  %v980_v40 = vsel %vm724_vm12, %v788_v25, %v916_v22  ;;  %2178 = vrsqrt.f32 %v3309_v54  ;;  %vm1248_vm1 = vcmp.eq.f32.partialorder %v3278_v43, inf }
  0xc1   :  { %v1236_v6 = vsel %vm1046_vm2, %v1045_v8, 0.0  ;;  %v1044_v46 = vmul.f32 %v980_v40, %v980_v40  ;;  %vm1250_vm3 = vcmp.eq.f32.partialorder %v3278_v43, 0.0  ;;  %2180 = vrsqrt.f32 %v3332_v24 }
  0xc2   :  { %1237 = vadd.xlane.f32.xlu1 %v1236_v6  ;;  %v1242_v48 = vsel %vm1241_vm13, %v3237_v23, %v1240_v56  ;;  %v3376_v59 = vpop.xlane.xlu0 %1084  ;;  %v1251_v15 = vand.u32 2147483648, %v3278_v43  ;;  %vm1355_vm4 = vcmp.eq.f32.partialorder %v3286_v17, 0.0  ;;  %vm1826_vm5 = vcmask 130112  }
  0xc3   :  { %v1245_v50 = vsel %vm1243_vm14, %v1244_v35, %v1242_v48  ;;  %v1233_v13 = vsel %vm1046_vm2, %v1044_v46, 0.0  ;;  %vm1353_vm2 = vcmp.eq.f32.partialorder %v3286_v17, inf  ;;  %v1356_v58 = vand.u32 2147483648, %v3286_v17 }
  0xc4   :  { %v1687_v51 = vsub.f32 0.0, %v1245_v50  ;;  %1234 = vadd.xlane.f32.xlu0 %v1233_v13  ;;  %v3386_v23 = vpop.xlane.xlu1 %1087  ;;  %vm1255_vm6 = vcmp.eq.f32.partialorder %v3307_v1, inf  ;;  %2182 = vrsqrt.f32 %v3341_v34  ;;  %vm1257_vm7 = vcmp.eq.f32.partialorder %v3307_v1, 0.0 }
  0xc5   :  { %v2171_v38 = vpop.eup %2170  ;;  %v1258_v60 = vand.u32 2147483648, %v3307_v1  ;;  %vm1297_vm8 = vcmp.eq.f32.partialorder %v3309_v54, inf  ;;  %2184 = vrsqrt.f32 %v3349_v55  ;;  %vm1299_vm9 = vcmp.eq.f32.partialorder %v3309_v54, 0.0 }
  0xc6   :  { %v3389_v53 = vrot.slane %v1687_v51, %v2376_v21  ;;  %v3394_v47 = vpop.xlane.xlu0 %1066  ;;  %v1303_v5 = vmul.f32 %v2171_v38, %v3265_v45  ;;  %v1300_v62 = vand.u32 2147483648, %v3309_v54  ;;  %vm1262_vm10 = vcmp.eq.f32.partialorder %v3332_v24, inf }
  0xc7   :  { %v2173_v41 = vpop.eup %2172  ;;  %2186 = vrsqrt.f32 %v3362_v52  ;;  %vm1264_vm11 = vcmp.eq.f32.partialorder %v3332_v24, 0.0  ;;  %v1265_v31 = vand.u32 2147483648, %v3332_v24  ;;  %vm1269_vm12 = vcmp.eq.f32.partialorder %v3341_v34, inf }
  0xc8   :  { %v1305_v61 = vsel %vm1304_vm15, %v3265_v45, %v1303_v5  ;;  %v2175_v18 = vpop.eup %2174  ;;  %v1247_v0 = vmul.f32 %v2173_v41, %v3278_v43  ;;  %2188 = vrsqrt.f32 %v3366_v39  ;;  %vm1271_vm13 = vcmp.eq.f32.partialorder %v3341_v34, 0.0 }
  0xc9   :  { %v1308_v63 = vsel %vm1306_vm0, %v1307_v42, %v1305_v61  ;;  %v1352_v2 = vmul.f32 %v2175_v18, %v3286_v17  ;;  %v2177_v57 = vpop.eup %2176  ;;  %v1272_v3 = vand.u32 2147483648, %v3341_v34  ;;  %v1279_v14 = vand.u32 2147483648, %v3349_v55 }
  0xca   :  { %v1696_v44 = vsub.f32 0.0, %v1308_v63  ;;  %v3419_v12 = vpop.xlane.xlu1 %1069  ;;  %v1249_v45 = vsel %vm1248_vm1, %v3278_v43, %v1247_v0  ;;  %v1254_v33 = vmul.f32 %v2177_v57, %v3307_v1  ;;  %vm1278_vm15 = vcmp.eq.f32.partialorder %v3349_v55, 0.0  ;;  %v2179_v27 = vpop.eup %2178 }
  0xcb   :  { %v1252_v32 = vsel %vm1250_vm3, %v1251_v15, %v1249_v45  ;;  %v1354_v26 = vsel %vm1353_vm2, %v3286_v17, %v1352_v2  ;;  %vm1311_vm0 = vcmp.eq.f32.partialorder %v3362_v52, inf  ;;  %vm4283_vm1 = vcmask 1041409   ;;  %v2181_v43 = vpop.eup %2180 }
  0xcc   :  { %v3428_v49 = vpop.xlane.xlu0 %1090  ;;  %v1862_v7 = vrot.slane %v1696_v44, %v2390_v28  ;;  %v1688_v20 = vsub.f32 0.0, %v1252_v32  ;;  %v1357_v29 = vsel %vm1355_vm4, %v1356_v58, %v1354_v26  ;;  %vm1313_vm14 = vcmp.eq.f32.partialorder %v3362_v52, 0.0 }
  0xcd   :  { %2190 = vrsqrt.f32 %v3376_v59  ;;  %v1703_v16 = vsub.f32 0.0, %v1357_v29  ;;  %v1256_v30 = vsel %vm1255_vm6, %v3307_v1, %v1254_v33  ;;  %v1296_v9 = vmul.f32 %v2179_v27, %v3309_v54 }
  0xce   :  { %v1314_v11 = vand.u32 2147483648, %v3362_v52  ;;  %v1825_v19 = vrot.slane %v1688_v20, %v2390_v28  ;;  %v1259_v17 = vsel %vm1257_vm7, %v1258_v60, %v1256_v30  ;;  %v1261_v25 = vmul.f32 %v2181_v43, %v3332_v24  ;;  %v2183_v36 = vpop.eup %2182 }
  0xcf   :  { %vm1318_vm3 = vcmp.eq.f32.partialorder %v3366_v39, inf  ;;  %v3456_v4 = vrot.slane %v1703_v16, %v2376_v21  ;;  %v1689_v37 = vsub.f32 0.0, %v1259_v17  ;;  %v1298_v8 = vsel %vm1297_vm8, %v3309_v54, %v1296_v9  ;;  %v2185_v22 = vpop.eup %2184 }
  0xd0   :  { %v3453_v10 = vpop.xlane.xlu0 %1099  ;;  %vm4282_vm2 = vcmask 1042434   ;;  %2192 = vrsqrt.f32 %v3386_v23  ;;  %v1827_v56 = vsel %vm1826_vm5, %v1825_v19, %v3389_v53  ;;  %v1301_v6 = vsel %vm1299_vm9, %v1300_v62, %v1298_v8 }
  0xd1   :  { %v3462_v1 = vpop.xlane.xlu1 %1102  ;;  %v1263_v40 = vsel %vm1262_vm10, %v3332_v24, %v1261_v25  ;;  %v1268_v35 = vmul.f32 %v2183_v36, %v3341_v34  ;;  %v2187_v46 = vpop.eup %2186  ;;  %v1831_v48 = vrot.slane %v1689_v37, %v2376_v21  ;;  %v1695_v50 = vsub.f32 0.0, %v1301_v6 }
  0xd2   :  { %v1266_v13 = vsel %vm1264_vm11, %v1265_v31, %v1263_v40  ;;  %v1275_v51 = vmul.f32 %v2185_v22, %v3349_v55  ;;  %v1310_v38 = vmul.f32 %v2187_v46, %v3362_v52  ;;  %vm1320_vm4 = vcmp.eq.f32.partialorder %v3366_v39, 0.0  ;;  %v2189_v53 = vpop.eup %2188 }
  0xd3   :  { %v1690_v42 = vsub.f32 0.0, %v1266_v13  ;;  %v1270_v54 = vsel %vm1269_vm12, %v3341_v34, %v1268_v35  ;;  %v1858_v15 = vrot.slane %v1695_v50, %v2376_v21  ;;  %vm4297_vm6 = vcmp.eq.f32.partialorder %v3349_v55, inf }
  0xd4   :  { %v1273_v5 = vsel %vm1271_vm13, %v1272_v3, %v1270_v54  ;;  %v1277_v24 = vsel %vm4297_vm6, %v3349_v55, %v1275_v51  ;;  %v1321_v58 = vand.u32 2147483648, %v3366_v39  ;;  %v1312_v62 = vsel %vm1311_vm0, %v3362_v52, %v1310_v38 }
  0xd5   :  { %v1835_v60 = vrot.slane %v1690_v42, %v2390_v28  ;;  %v1691_v41 = vsub.f32 0.0, %v1273_v5  ;;  %v1280_v61 = vsel %vm1278_vm15, %v1279_v14, %v1277_v24  ;;  %v3497_v34 = vsel %vm1826_vm5, %v1862_v7, %v1858_v15  ;;  %v3502_v44 = vpop.xlane.xlu1 %1144 }
  0xd6   :  { %v3494_v18 = vpop.xlane.xlu0 %1105  ;;  %v1692_v63 = vsub.f32 0.0, %v1280_v61  ;;  %v1315_v0 = vsel %vm1313_vm14, %v1314_v11, %v1312_v62  ;;  %v1317_v31 = vmul.f32 %v2189_v53, %v3366_v39  ;;  %vm1325_vm7 = vcmp.eq.f32.partialorder %v3376_v59, inf }
  0xd7   :  { %v2191_v2 = vpop.eup %2190  ;;  %v1836_v55 = vsel %vm1826_vm5, %v1835_v60, %v1831_v48  ;;  %v1840_v57 = vrot.slane %v1691_v41, %v2376_v21  ;;  %v1697_v45 = vsub.f32 0.0, %v1315_v0  ;;  %v1328_v33 = vand.u32 2147483648, %v3376_v59 }
  0xd8   :  { %v2108_v3 = vsel %vm4283_vm1, %v1836_v55, %v1827_v56  ;;  %v1844_v14 = vrot.slane %v1692_v63, %v2390_v28  ;;  %v1319_v52 = vsel %vm1318_vm3, %v3366_v39, %v1317_v31  ;;  %v1324_v7 = vmul.f32 %v2191_v2, %v3376_v59 }
  0xd9   :  { %v1867_v32 = vrot.slane %v1697_v45, %v2376_v21  ;;  %v1322_v26 = vsel %vm1320_vm4, %v1321_v58, %v1319_v52  ;;  %2194 = vrsqrt.f32 %v3394_v47  ;;  %vm1327_vm8 = vcmp.eq.f32.partialorder %v3376_v59, 0.0 }
  0xda   :  { %v3518_v27 = vpop.xlane.xlu0 %1147  ;;  %v2193_v20 = vpop.eup %2192  ;;  %v1845_v29 = vsel %vm1826_vm5, %v1844_v14, %v1840_v57  ;;  %v1698_v43 = vsub.f32 0.0, %v1322_v26  ;;  %v1326_v16 = vsel %vm1325_vm7, %v3376_v59, %v1324_v7  ;;  %vm1332_vm9 = vcmp.eq.f32.partialorder %v3386_v23, inf }
  0xdb   :  { %v3524_v30 = vsel %vm4282_vm2, %v1845_v29, %v2108_v3  ;;  %v1329_v9 = vsel %vm1327_vm8, %v1328_v33, %v1326_v16  ;;  %v1331_v39 = vmul.f32 %v2193_v20, %v3386_v23  ;;  %v1335_v17 = vand.u32 2147483648, %v3386_v23 }
  0xdc   :  { %v1871_v11 = vrot.slane %v1698_v43, %v2390_v28  ;;  %v1699_v19 = vsub.f32 0.0, %v1329_v9  ;;  %vm1334_vm10 = vcmp.eq.f32.partialorder %v3386_v23, 0.0  ;;  %2196 = vrsqrt.f32 %v3419_v12 }
  0xdd   :  { %v3530_v25 = vpop.xlane.xlu1 %1150  ;;  %v1333_v36 = vsel %vm1332_vm9, %v3386_v23, %v1331_v39  ;;  %2198 = vrsqrt.f32 %v3428_v49  ;;  %vm1283_vm11 = vcmp.eq.f32.partialorder %v3394_v47, inf  ;;  %vm1285_vm12 = vcmp.eq.f32.partialorder %v3394_v47, 0.0 }
  0xde   :  { %v3536_v59 = vsel %vm1826_vm5, %v1871_v11, %v1867_v32  ;;  %v1876_v37 = vrot.slane %v1699_v19, %v2376_v21  ;;  %v1336_v8 = vsel %vm1334_vm10, %v1335_v17, %v1333_v36  ;;  %2200 = vrsqrt.f32 %v3462_v1 }
  0xdf   :  { %v1700_v22 = vsub.f32 0.0, %v1336_v8  ;;  %v3540_v56 = vpop.xlane.xlu0 %1153  ;;  %2202 = vrsqrt.f32 %v3453_v10  ;;  %v1286_v40 = vand.u32 2147483648, %v3394_v47  ;;  %vm1290_vm13 = vcmp.eq.f32.partialorder %v3419_v12, inf }
  0xe0   :  { %vm1292_vm14 = vcmp.eq.f32.partialorder %v3419_v12, 0.0  ;;  %2204 = vrsqrt.f32 %v3502_v44  ;;  %v1293_v48 = vand.u32 2147483648, %v3419_v12  ;;  %vm1339_vm15 = vcmp.eq.f32.partialorder %v3428_v49, inf }
  0xe1   :  { %v1880_v6 = vrot.slane %v1700_v22, %v2390_v28  ;;  %v3547_v23 = vpop.xlane.xlu1 %1192  ;;  %2206 = vrsqrt.f32 %v3494_v18  ;;  %vm1341_vm0 = vcmp.eq.f32.partialorder %v3428_v49, 0.0  ;;  %v1342_v13 = vand.u32 2147483648, %v3428_v49 }
  0xe2   :  { %vm1367_vm3 = vcmp.eq.f32.partialorder %v3462_v1, inf  ;;  %vm1369_vm4 = vcmp.eq.f32.partialorder %v3462_v1, 0.0  ;;  %v1370_v51 = vand.u32 2147483648, %v3462_v1  ;;  %vm1360_vm6 = vcmp.eq.f32.partialorder %v3453_v10, inf }
  0xe3   :  { %v2195_v35 = vpop.eup %2194  ;;  %v3554_v46 = vsel %vm1826_vm5, %v1880_v6, %v1876_v37  ;;  %2208 = vrsqrt.f32 %v3530_v25  ;;  %vm2111_vm7 = vcmask 1043459   ;;  %vm1362_vm8 = vcmp.eq.f32.partialorder %v3453_v10, 0.0 }
  0xe4   :  { %v1282_v50 = vmul.f32 %v2195_v35, %v3394_v47  ;;  %v1363_v38 = vand.u32 2147483648, %v3453_v10  ;;  %2210 = vrsqrt.f32 %v3518_v27  ;;  %vm4284_vm9 = vcmask 1044484  }
  0xe5   :  { %vm1465_vm10 = vcmp.eq.f32.partialorder %v3502_v44, inf  ;;  %vm1467_vm2 = vcmp.eq.f32.partialorder %v3502_v44, 0.0  ;;  %2212 = vrsqrt.f32 %v3547_v23  ;;  %v1468_v60 = vand.u32 2147483648, %v3502_v44 }
  0xe6   :  { %v3567_v42 = vpop.xlane.xlu0 %1195  ;;  %v1284_v54 = vsel %vm1283_vm11, %v3394_v47, %v1282_v50  ;;  %v2197_v53 = vpop.eup %2196  ;;  %vm1374_vm11 = vcmp.eq.f32.partialorder %v3494_v18, inf  ;;  %v1377_v47 = vand.u32 2147483648, %v3494_v18  ;;  %v1482_v61 = vand.u32 2147483648, %v3530_v25 }
  0xe7   :  { %v1287_v15 = vsel %vm1285_vm12, %v1286_v40, %v1284_v54  ;;  %v1289_v58 = vmul.f32 %v2197_v53, %v3419_v12  ;;  %v2199_v41 = vpop.eup %2198  ;;  %2214 = vrsqrt.f32 %v3540_v56  ;;  %v1475_v2 = vand.u32 2147483648, %v3518_v27 }
  0xe8   :  { %v3580_v5 = vpop.xlane.xlu1 %1198  ;;  %v1693_v24 = vsub.f32 0.0, %v1287_v15  ;;  %v2201_v62 = vpop.eup %2200  ;;  %v1338_v31 = vmul.f32 %v2199_v41, %v3428_v49  ;;  %vm1479_vm12 = vcmp.eq.f32.partialorder %v3530_v25, inf  ;;  %v1580_v14 = vand.u32 2147483648, %v3547_v23 }
  0xe9   :  { %v1291_v0 = vsel %vm1290_vm13, %v3419_v12, %v1289_v58  ;;  %v2203_v57 = vpop.eup %2202  ;;  %v1366_v3 = vmul.f32 %v2201_v62, %v3462_v1  ;;  %2216 = vrsqrt.f32 %v3580_v5  ;;  %vm1481_vm13 = vcmp.eq.f32.partialorder %v3530_v25, 0.0 }
  0xea   :  { %v1849_v63 = vrot.slane %v1693_v24, %v2376_v21  ;;  %v1294_v45 = vsel %vm1292_vm14, %v1293_v48, %v1291_v0  ;;  %v2205_v52 = vpop.eup %2204  ;;  %v1340_v32 = vsel %vm1339_vm15, %v3428_v49, %v1338_v31  ;;  %v1359_v26 = vmul.f32 %v2203_v57, %v3453_v10 }
  0xeb   :  { %v3595_v55 = vpop.xlane.xlu0 %1201  ;;  %v1694_v7 = vsub.f32 0.0, %v1294_v45  ;;  %v1489_v12 = vand.u32 2147483648, %v3540_v56  ;;  %v2207_v20 = vpop.eup %2206  ;;  %v1343_v29 = vsel %vm1341_vm0, %v1342_v13, %v1340_v32  ;;  %v1368_v43 = vsel %vm1367_vm3, %v3462_v1, %v1366_v3 }
  0xec   :  { %v3611_v33 = vpop.xlane.xlu1 %1108  ;;  %v1464_v16 = vmul.f32 %v2205_v52, %v3502_v44  ;;  %vm1474_vm15 = vcmp.eq.f32.partialorder %v3518_v27, 0.0  ;;  %vm1579_vm14 = vcmp.eq.f32.partialorder %v3547_v23, 0.0  ;;  %vm1486_vm1 = vcmp.eq.f32.partialorder %v3540_v56, inf }
  0xed   :  { %2218 = vrsqrt.f32 %v3567_v42  ;;  %v1853_v9 = vrot.slane %v1694_v7, %v2390_v28  ;;  %v1701_v39 = vsub.f32 0.0, %v1343_v29  ;;  %v1371_v49 = vsel %vm1369_vm4, %v1370_v51, %v1368_v43  ;;  %v2209_v19 = vpop.eup %2208 }
  0xee   :  { %v1361_v11 = vsel %vm1360_vm6, %v3453_v10, %v1359_v26  ;;  %vm1488_vm0 = vcmp.eq.f32.partialorder %v3540_v56, 0.0  ;;  %v1705_v17 = vsub.f32 0.0, %v1371_v49  ;;  %v1466_v37 = vsel %vm1465_vm10, %v3502_v44, %v1464_v16  ;;  %v2211_v22 = vpop.eup %2210 }
  0xef   :  { %v1364_v36 = vsel %vm1362_vm8, %v1363_v38, %v1361_v11  ;;  %v1373_v8 = vmul.f32 %v2207_v20, %v3494_v18  ;;  %v1854_v1 = vsel %vm1826_vm5, %v1853_v9, %v1849_v63  ;;  %v3638_v6 = vrot.slane %v1701_v39, %v2376_v21  ;;  %v2213_v10 = vpop.eup %2212 }
  0xf0   :  { %v1704_v40 = vsub.f32 0.0, %v1364_v36  ;;  %v1469_v35 = vsel %vm1467_vm2, %v1468_v60, %v1466_v37  ;;  %v2112_v50 = vsel %vm2111_vm7, %v1854_v1, %v3524_v30  ;;  %v1903_v13 = vrot.slane %v1705_v17, %v2376_v21  ;;  %v3660_v15 = vpop.xlane.xlu1 %1156 }
  0xf1   :  { %v3642_v48 = vpop.xlane.xlu0 %1111  ;;  %v1719_v51 = vsub.f32 0.0, %v1469_v35  ;;  %v1375_v54 = vsel %vm1374_vm11, %v3494_v18, %v1373_v8  ;;  %vm1591_vm3 = vcmp.eq.f32.partialorder %v3580_v5, inf  ;;  %v3653_v38 = vsel %vm4284_vm9, %v3497_v34, %v2112_v50  ;;  %v2215_v24 = vpop.eup %2214 }
  0xf2   :  { %v1898_v44 = vrot.slane %v1704_v40, %v2390_v28  ;;  %vm4298_vm2 = vcmp.eq.f32.partialorder %v3494_v18, 0.0  ;;  %v1478_v30 = vmul.f32 %v2209_v19, %v3530_v25  ;;  %vm1593_vm4 = vcmp.eq.f32.partialorder %v3580_v5, 0.0 }
  0xf3   :  { %v1378_v53 = vsel %vm4298_vm2, %v1377_v47, %v1375_v54  ;;  %v1966_v58 = vrot.slane %v1719_v51, %v2376_v21  ;;  %v1471_v41 = vmul.f32 %v2211_v22, %v3518_v27  ;;  %v1576_v34 = vmul.f32 %v2213_v10, %v3547_v23  ;;  %v2217_v0 = vpop.eup %2216 }
  0xf4   :  { %v1706_v60 = vsub.f32 0.0, %v1378_v53  ;;  %v1899_v62 = vsel %vm1826_vm5, %v1898_v44, %v3456_v4  ;;  %v1480_v18 = vsel %vm1479_vm12, %v3530_v25, %v1478_v30  ;;  %v1485_v47 = vmul.f32 %v2215_v24, %v3540_v56 }
  0xf5   :  { %v1594_v63 = vand.u32 2147483648, %v3580_v5  ;;  %v1483_v57 = vsel %vm1481_vm13, %v1482_v61, %v1480_v18  ;;  %vm4299_vm6 = vcmp.eq.f32.partialorder %v3518_v27, inf  ;;  %vm4300_vm8 = vcmp.eq.f32.partialorder %v3547_v23, inf }
  0xf6   :  { %v1907_v31 = vrot.slane %v1706_v60, %v2390_v28  ;;  %v1473_v4 = vsel %vm4299_vm6, %v3518_v27, %v1471_v41  ;;  %v1578_v45 = vsel %vm4300_vm8, %v3547_v23, %v1576_v34  ;;  %v1721_v3 = vsub.f32 0.0, %v1483_v57  ;;  %v3694_v7 = vpop.xlane.xlu0 %1159 }
  0xf7   :  { %v1476_v52 = vsel %vm1474_vm15, %v1475_v2, %v1473_v4  ;;  %v1581_v25 = vsel %vm1579_vm14, %v1580_v14, %v1578_v45  ;;  %v1487_v61 = vsel %vm1486_vm1, %v3540_v56, %v1485_v47  ;;  %v2219_v32 = vpop.eup %2218  ;;  %vm4301_vm10 = vcmask 1041409  }
  0xf8   :  { %v1908_v26 = vsel %vm1826_vm5, %v1907_v31, %v1903_v13  ;;  %v1720_v20 = vsub.f32 0.0, %v1476_v52  ;;  %v1735_v29 = vsub.f32 0.0, %v1581_v25  ;;  %v1490_v27 = vsel %vm1488_vm0, %v1489_v12, %v1487_v61  ;;  %vm4302_vm12 = vmmov %vm4301_vm10 }
  0xf9   :  { %v3700_v2 = vsel %vm4301_vm10, %v1908_v26, %v1899_v62  ;;  %v1975_v23 = vrot.slane %v1721_v3, %v2376_v21  ;;  %v1722_v14 = vsub.f32 0.0, %v1490_v27  ;;  %v1590_v43 = vmul.f32 %v2217_v0, %v3580_v5  ;;  %v3704_v16 = vpop.xlane.xlu1 %1204 }
  0xfa   :  { %v1970_v9 = vrot.slane %v1720_v20, %v2390_v28  ;;  %v2038_v39 = vrot.slane %v1735_v29, %v2376_v21  ;;  %v1583_v49 = vmul.f32 %v2219_v32, %v3567_v42  ;;  %vm1584_vm1 = vcmp.eq.f32.partialorder %v3567_v42, inf }
  0xfb   :  { %v1979_v56 = vrot.slane %v1722_v14, %v2390_v28  ;;  %v1592_v12 = vsel %vm1591_vm3, %v3580_v5, %v1590_v43  ;;  %v1587_v11 = vand.u32 2147483648, %v3567_v42  ;;  %2220 = vrsqrt.f32 %v3611_v33 }
  0xfc   :  { %v1971_v19 = vsel %vm1826_vm5, %v1970_v9, %v1966_v58  ;;  %v1595_v17 = vsel %vm1593_vm4, %v1594_v63, %v1592_v12  ;;  %v1585_v36 = vsel %vm1584_vm1, %v3567_v42, %v1583_v49  ;;  %vm1586_vm11 = vcmp.eq.f32.partialorder %v3567_v42, 0.0  ;;  %v3724_v40 = vpop.xlane.xlu0 %1207 }
  0xfd   :  { %v1980_v37 = vsel %vm1826_vm5, %v1979_v56, %v1975_v23  ;;  %v1737_v8 = vsub.f32 0.0, %v1595_v17  ;;  %v1588_v22 = vsel %vm1586_vm11, %v1587_v11, %v1585_v36  ;;  %v3722_v1 = vpop.xlane.xlu1 %1114  ;;  %2222 = vrsqrt.f32 %v3595_v55 }
  0xfe   :  { %v3727_v35 = vsel %vm4302_vm12, %v1980_v37, %v1971_v19  ;;  %v1736_v10 = vsub.f32 0.0, %v1588_v22  ;;  %2224 = vrsqrt.f32 %v3660_v15  ;;  %vm1381_vm13 = vcmp.eq.f32.partialorder %v3611_v33, inf }
  0xff   :  { %v3731_v5 = vrot.slane %v1737_v8, %v2376_v21  ;;  %2226 = vrsqrt.f32 %v3642_v48  ;;  %vm1383_vm14 = vcmp.eq.f32.partialorder %v3611_v33, 0.0  ;;  %v1384_v51 = vand.u32 2147483648, %v3611_v33 }
 0x100   :  { %v2042_v50 = vrot.slane %v1736_v10, %v2390_v28  ;;  %2228 = vrsqrt.f32 %v3704_v16  ;;  %vm1598_vm15 = vcmp.eq.f32.partialorder %v3595_v55, inf  ;;  %vm1600_vm0 = vcmp.eq.f32.partialorder %v3595_v55, 0.0 }
 0x101   :  { %v3740_v13 = vpop.xlane.xlu1 %1162  ;;  %2230 = vrsqrt.f32 %v3694_v7  ;;  %v1601_v44 = vand.u32 2147483648, %v3595_v55  ;;  %vm1493_vm3 = vcmp.eq.f32.partialorder %v3660_v15, inf  ;;  %vm1495_vm2 = vcmp.eq.f32.partialorder %v3660_v15, 0.0 }
 0x102   :  { %v3737_v42 = vsel %vm1826_vm5, %v2042_v50, %v2038_v39  ;;  %2232 = vrsqrt.f32 %v3722_v1  ;;  %v1496_v30 = vand.u32 2147483648, %v3660_v15  ;;  %vm1388_vm4 = vcmp.eq.f32.partialorder %v3642_v48, inf }
 0x103   :  { %v3746_v54 = vpop.xlane.xlu0 %1117  ;;  %2234 = vrsqrt.f32 %v3724_v40  ;;  %vm1390_vm6 = vcmp.eq.f32.partialorder %v3642_v48, 0.0  ;;  %v1391_v58 = vand.u32 2147483648, %v3642_v48  ;;  %vm1605_vm8 = vcmp.eq.f32.partialorder %v3704_v16, inf }
 0x104   :  { %2236 = vrsqrt.f32 %v3740_v13  ;;  %vm1607_vm10 = vcmp.eq.f32.partialorder %v3704_v16, 0.0  ;;  %v1608_v62 = vand.u32 2147483648, %v3704_v16  ;;  %vm1500_vm1 = vcmp.eq.f32.partialorder %v3694_v7, inf }
 0x105   :  { %v2221_v53 = vpop.eup %2220  ;;  %2238 = vrsqrt.f32 %v3746_v54  ;;  %vm1502_vm11 = vcmp.eq.f32.partialorder %v3694_v7, 0.0  ;;  %v1503_v0 = vand.u32 2147483648, %v3694_v7  ;;  %vm1395_vm12 = vcmp.eq.f32.partialorder %v3722_v1, inf }
 0x106   :  { %v1380_v24 = vmul.f32 %v2221_v53, %v3611_v33  ;;  %v1398_v4 = vand.u32 2147483648, %v3722_v1  ;;  %v1615_v45 = vand.u32 2147483648, %v3724_v40  ;;  %v1510_v25 = vand.u32 2147483648, %v3740_v13 }
 0x107   :  { %v3764_v60 = vpop.xlane.xlu0 %1165  ;;  %v2223_v41 = vpop.eup %2222  ;;  %v1405_v27 = vand.u32 2147483648, %v3746_v54  ;;  %vm1614_vm9 = vcmp.eq.f32.partialorder %v3724_v40, 0.0 }
 0x108   :  { %v1382_v34 = vsel %vm1381_vm13, %v3611_v33, %v1380_v24  ;;  %v3772_v18 = vpop.xlane.xlu1 %1210  ;;  %v1597_v63 = vmul.f32 %v2223_v41, %v3595_v55  ;;  %v2225_v31 = vpop.eup %2224  ;;  %vm1397_vm13 = vcmp.eq.f32.partialorder %v3722_v1, 0.0 }
 0x109   :  { %v1385_v47 = vsel %vm1383_vm14, %v1384_v51, %v1382_v34  ;;  %2240 = vrsqrt.f32 %v3772_v18  ;;  %v2227_v3 = vpop.eup %2226  ;;  %v1492_v52 = vmul.f32 %v2225_v31, %v3660_v15  ;;  %vm1612_vm14 = vcmp.eq.f32.partialorder %v3724_v40, inf }
 0x10a   :  { %v1707_v57 = vsub.f32 0.0, %v1385_v47  ;;  %v1599_v33 = vsel %vm1598_vm15, %v3595_v55, %v1597_v63  ;;  %2242 = vrsqrt.f32 %v3764_v60  ;;  %v2229_v32 = vpop.eup %2228  ;;  %v1387_v29 = vmul.f32 %v2227_v3, %v3642_v48 }
 0x10b   :  { %v3789_v61 = vpop.xlane.xlu0 %1213  ;;  %v1602_v20 = vsel %vm1600_vm0, %v1601_v44, %v1599_v33  ;;  %vm1507_vm15 = vcmp.eq.f32.partialorder %v3740_v13, inf  ;;  %v2231_v23 = vpop.eup %2230  ;;  %v1494_v43 = vsel %vm1493_vm3, %v3660_v15, %v1492_v52  ;;  %v1604_v9 = vmul.f32 %v2229_v32, %v3704_v16 }
 0x10c   :  { %v1912_v26 = vrot.slane %v1707_v57, %v2376_v21  ;;  %v1738_v14 = vsub.f32 0.0, %v1602_v20  ;;  %vm1509_vm0 = vcmp.eq.f32.partialorder %v3740_v13, 0.0  ;;  %v1622_v55 = vand.u32 2147483648, %v3772_v18  ;;  %v2233_v39 = vpop.eup %2232 }
 0x10d   :  { %v1497_v49 = vsel %vm1495_vm2, %v1496_v30, %v1494_v43  ;;  %v1389_v56 = vsel %vm1388_vm4, %v3642_v48, %v1387_v29  ;;  %v1499_v12 = vmul.f32 %v2231_v23, %v3694_v7  ;;  %vm1402_vm3 = vcmp.eq.f32.partialorder %v3746_v54, inf  ;;  %v2235_v11 = vpop.eup %2234 }
 0x10e   :  { %2244 = vrsqrt.f32 %v3789_v61  ;;  %v2051_v19 = vrot.slane %v1738_v14, %v2390_v28  ;;  %v1723_v17 = vsub.f32 0.0, %v1497_v49  ;;  %v1392_v36 = vsel %vm1390_vm6, %v1391_v58, %v1389_v56  ;;  %v2237_v37 = vpop.eup %2236 }
 0x10f   :  { %v1606_v15 = vsel %vm1605_vm8, %v3704_v16, %v1604_v9  ;;  %vm1404_vm2 = vcmp.eq.f32.partialorder %v3746_v54, 0.0  ;;  %vm1619_vm4 = vcmp.eq.f32.partialorder %v3772_v18, inf  ;;  %v1708_v8 = vsub.f32 0.0, %v1392_v36  ;;  %v2239_v50 = vpop.eup %2238 }
 0x110   :  { %v1609_v22 = vsel %vm1607_vm10, %v1608_v62, %v1606_v15  ;;  %v1501_v10 = vsel %vm1500_vm1, %v3694_v7, %v1499_v12  ;;  %v1394_v48 = vmul.f32 %v2233_v39, %v3722_v1  ;;  %vm1621_vm6 = vcmp.eq.f32.partialorder %v3772_v18, 0.0 }
 0x111   :  { %v2052_v51 = vsel %vm1826_vm5, %v2051_v19, %v3731_v5  ;;  %v1984_v44 = vrot.slane %v1723_v17, %v2376_v21  ;;  %v1739_v53 = vsub.f32 0.0, %v1609_v22  ;;  %v1504_v30 = vsel %vm1502_vm11, %v1503_v0, %v1501_v10 }
 0x112   :  { %vm4303_vm8 = vcmask 1041409   ;;  %v1916_v24 = vrot.slane %v1708_v8, %v2390_v28  ;;  %v1724_v58 = vsub.f32 0.0, %v1504_v30  ;;  %v1396_v41 = vsel %vm1395_vm12, %v3722_v1, %v1394_v48  ;;  %v3839_v34 = vpop.xlane.xlu1 %1120 }
 0x113   :  { %v2135_v16 = vsel %vm4303_vm8, %v2052_v51, %v3737_v42  ;;  %v2241_v62 = vpop.eup %2240  ;;  %v2056_v5 = vrot.slane %v1739_v53, %v2376_v21  ;;  %v1611_v47 = vmul.f32 %v2235_v11, %v3724_v40  ;;  %v1506_v7 = vmul.f32 %v2237_v37, %v3740_v13  ;;  %v3845_v63 = vpop.xlane.xlu0 %1123 }
 0x114   :  { %vm1514_vm10 = vcmp.eq.f32.partialorder %v3764_v60, inf  ;;  %v1917_v42 = vsel %vm1826_vm5, %v1916_v24, %v1912_v26  ;;  %v1988_v0 = vrot.slane %v1724_v58, %v2390_v28  ;;  %v1399_v31 = vsel %vm1397_vm13, %v1398_v4, %v1396_v41  ;;  %v2243_v3 = vpop.eup %2242 }
 0x115   :  { %v1401_v57 = vmul.f32 %v2239_v50, %v3746_v54  ;;  %vm4304_vm1 = vcmask 1042434   ;;  %v1613_v52 = vsel %vm1612_vm14, %v3724_v40, %v1611_v47  ;;  %v1508_v32 = vsel %vm1507_vm15, %v3740_v13, %v1506_v7 }
 0x116   :  { %v2122_v33 = vsel %vm4304_vm1, %v1917_v42, %v3700_v2  ;;  %v1618_v26 = vmul.f32 %v2241_v62, %v3772_v18  ;;  %v1989_v20 = vsel %vm1826_vm5, %v1988_v0, %v1984_v44  ;;  %v1616_v1 = vsel %vm1614_vm9, %v1615_v45, %v1613_v52  ;;  %v3871_v29 = vpop.xlane.xlu1 %1168  ;;  %vm4305_vm11 = vmmov %vm4304_vm1 }
 0x117   :  { %v1511_v2 = vsel %vm1509_vm0, %v1510_v25, %v1508_v32  ;;  %v1517_v4 = vand.u32 2147483648, %v3764_v60  ;;  %v2129_v23 = vsel %vm4305_vm11, %v1989_v20, %v3727_v35  ;;  %v1709_v14 = vsub.f32 0.0, %v1399_v31  ;;  %vm4306_vm13 = vmmov %vm4304_vm1 }
 0x118   :  { %v1740_v43 = vsub.f32 0.0, %v1616_v1  ;;  %v1403_v9 = vsel %vm1402_vm3, %v3746_v54, %v1401_v57  ;;  %v2245_v40 = vpop.eup %2244  ;;  %v1620_v45 = vsel %vm1619_vm4, %v3772_v18, %v1618_v26  ;;  %v1513_v25 = vmul.f32 %v2243_v3, %v3764_v60 }
 0x119   :  { %v1406_v13 = vsel %vm1404_vm2, %v1405_v27, %v1403_v9  ;;  %2246 = vrsqrt.f32 %v3839_v34  ;;  %v1725_v39 = vsub.f32 0.0, %v1511_v2  ;;  %v1623_v56 = vsel %vm1621_vm6, %v1622_v55, %v1620_v45  ;;  %v3892_v12 = vpop.xlane.xlu0 %1171 }
 0x11a   :  { %v2060_v35 = vrot.slane %v1740_v43, %v2390_v28  ;;  %v1710_v49 = vsub.f32 0.0, %v1406_v13  ;;  %v1741_v54 = vsub.f32 0.0, %v1623_v56  ;;  %v1515_v27 = vsel %vm1514_vm10, %v3764_v60, %v1513_v25  ;;  %v3902_v18 = vpop.xlane.xlu1 %1216 }
 0x11b   :  { %vm1516_vm9 = vcmp.eq.f32.partialorder %v3764_v60, 0.0  ;;  %vm1626_vm12 = vcmp.eq.f32.partialorder %v3789_v61, inf  ;;  %v1921_v11 = vrot.slane %v1709_v14, %v2376_v21  ;;  %v1625_v8 = vmul.f32 %v2245_v40, %v3789_v61 }
 0x11c   :  { %v2061_v19 = vsel %vm1826_vm5, %v2060_v35, %v2056_v5  ;;  %v1925_v17 = vrot.slane %v1710_v49, %v2390_v28  ;;  %v1518_v36 = vsel %vm1516_vm9, %v1517_v4, %v1515_v27  ;;  %v2065_v15 = vrot.slane %v1741_v54, %v2376_v21 }
 0x11d   :  { %v2136_v55 = vsel %vm4306_vm13, %v2061_v19, %v2135_v16  ;;  %v1726_v37 = vsub.f32 0.0, %v1518_v36  ;;  %v1993_v60 = vrot.slane %v1725_v39, %v2376_v21  ;;  %v1629_v10 = vand.u32 2147483648, %v3789_v61 }
 0x11e   :  { %v1926_v22 = vsel %vm1826_vm5, %v1925_v17, %v1921_v11  ;;  %2248 = vrsqrt.f32 %v3871_v29  ;;  %v1627_v51 = vsel %vm1626_vm12, %v3789_v61, %v1625_v8  ;;  %vm1628_vm14 = vcmp.eq.f32.partialorder %v3789_v61, 0.0  ;;  %v3919_v44 = vpop.xlane.xlu0 %1219 }
 0x11f   :  { %v3912_v48 = vsel %vm2111_vm7, %v1926_v22, %v2122_v33  ;;  %v1997_v50 = vrot.slane %v1726_v37, %v2390_v28  ;;  %v1630_v53 = vsel %vm1628_vm14, %v1629_v10, %v1627_v51  ;;  %2250 = vrsqrt.f32 %v3845_v63  ;;  %v3927_v58 = vpop.xlane.xlu1 %1126 }
 0x120   :  { %v1742_v16 = vsub.f32 0.0, %v1630_v53  ;;  %2252 = vrsqrt.f32 %v3902_v18  ;;  %vm1409_vm15 = vcmp.eq.f32.partialorder %v3839_v34, inf  ;;  %vm1411_vm0 = vcmp.eq.f32.partialorder %v3839_v34, 0.0 }
 0x121   :  { %v1998_v30 = vsel %vm1826_vm5, %v1997_v50, %v1993_v60  ;;  %2254 = vrsqrt.f32 %v3892_v12  ;;  %v1412_v5 = vand.u32 2147483648, %v3839_v34  ;;  %vm1521_vm3 = vcmp.eq.f32.partialorder %v3871_v29, inf }
 0x122   :  { %v3924_v24 = vsel %vm2111_vm7, %v1998_v30, %v2129_v23  ;;  %v2069_v61 = vrot.slane %v1742_v16, %v2390_v28  ;;  %v3936_v47 = vpop.xlane.xlu0 %1129  ;;  %vm1523_vm2 = vcmp.eq.f32.partialorder %v3871_v29, 0.0  ;;  %v1524_v42 = vand.u32 2147483648, %v3871_v29 }
 0x123   :  { %v2247_v41 = vpop.eup %2246  ;;  %2256 = vrsqrt.f32 %v3927_v58  ;;  %vm1416_vm4 = vcmp.eq.f32.partialorder %v3845_v63, inf  ;;  %vm1418_vm6 = vcmp.eq.f32.partialorder %v3845_v63, 0.0  ;;  %v1419_v3 = vand.u32 2147483648, %v3845_v63 }
 0x124   :  { %v1408_v62 = vmul.f32 %v2247_v41, %v3839_v34  ;;  %v2070_v7 = vsel %vm1826_vm5, %v2069_v61, %v2065_v15  ;;  %2258 = vrsqrt.f32 %v3919_v44  ;;  %vm1633_vm8 = vcmp.eq.f32.partialorder %v3902_v18, inf }
 0x125   :  { %v3944_v31 = vsel %vm2111_vm7, %v2070_v7, %v2136_v55  ;;  %vm1635_vm10 = vcmp.eq.f32.partialorder %v3902_v18, 0.0  ;;  %2260 = vrsqrt.f32 %v3936_v47  ;;  %vm1528_vm7 = vcmp.eq.f32.partialorder %v3892_v12, inf }
 0x126   :  { %v1410_v0 = vsel %vm1409_vm15, %v3839_v34, %v1408_v62  ;;  %v1636_v34 = vand.u32 2147483648, %v3902_v18  ;;  %vm1530_vm1 = vcmp.eq.f32.partialorder %v3892_v12, 0.0  ;;  %v1531_v1 = vand.u32 2147483648, %v3892_v12 }
 0x127   :  { %v1413_v57 = vsel %vm1411_vm0, %v1412_v5, %v1410_v0  ;;  %v3953_v32 = vpop.xlane.xlu1 %1174  ;;  %vm1423_vm11 = vcmp.eq.f32.partialorder %v3927_v58, inf  ;;  %vm1425_vm9 = vcmp.eq.f32.partialorder %v3927_v58, 0.0  ;;  %vm2115_vm12 = vcmask 1045509  }
 0x128   :  { %v2249_v33 = vpop.eup %2248  ;;  %v1711_v52 = vsub.f32 0.0, %v1413_v57  ;;  %2262 = vrsqrt.f32 %v3953_v32  ;;  %v1426_v14 = vand.u32 2147483648, %v3927_v58  ;;  %vm1640_vm13 = vcmp.eq.f32.partialorder %v3919_v44, inf }
 0x129   :  { %v1520_v26 = vmul.f32 %v2249_v33, %v3871_v29  ;;  %v2251_v20 = vpop.eup %2250  ;;  %v3963_v2 = vpop.xlane.xlu0 %1177  ;;  %vm1642_vm14 = vcmp.eq.f32.partialorder %v3919_v44, 0.0  ;;  %v1643_v40 = vand.u32 2147483648, %v3919_v44  ;;  %v3986_v49 = vsel %vm2115_vm12, %v3536_v59, %v3653_v38 }
 0x12a   :  { %v1415_v23 = vmul.f32 %v2251_v20, %v3845_v63  ;;  %2264 = vrsqrt.f32 %v3963_v2  ;;  %v2253_v43 = vpop.eup %2252  ;;  %v1930_v9 = vrot.slane %v1711_v52, %v2376_v21  ;;  %vm1535_vm15 = vcmp.eq.f32.partialorder %v3953_v32, inf }
 0x12b   :  { %v1522_v4 = vsel %vm1521_vm3, %v3871_v29, %v1520_v26  ;;  %v2255_v13 = vpop.eup %2254  ;;  %v1632_v35 = vmul.f32 %v2253_v43, %v3902_v18  ;;  %v1538_v29 = vand.u32 2147483648, %v3953_v32  ;;  %vm1430_vm0 = vcmp.eq.f32.partialorder %v3936_v47, inf }
 0x12c   :  { %v1525_v45 = vsel %vm1523_vm2, %v1524_v42, %v1522_v4  ;;  %v1417_v25 = vsel %vm1416_vm4, %v3845_v63, %v1415_v23  ;;  %v3981_v39 = vpop.xlane.xlu1 %1222  ;;  %v1527_v54 = vmul.f32 %v2255_v13, %v3892_v12  ;;  %vm1537_vm3 = vcmp.eq.f32.partialorder %v3953_v32, 0.0 }
 0x12d   :  { %v1420_v56 = vsel %vm1418_vm6, %v1419_v3, %v1417_v25  ;;  %2266 = vrsqrt.f32 %v3981_v39  ;;  %v2257_v27 = vpop.eup %2256  ;;  %v1634_v59 = vsel %vm1633_vm8, %v3902_v18, %v1632_v35  ;;  %vm1432_vm2 = vcmp.eq.f32.partialorder %v3936_v47, 0.0 }
 0x12e   :  { %v1712_v11 = vsub.f32 0.0, %v1420_v56  ;;  %v1433_v38 = vand.u32 2147483648, %v3936_v47  ;;  %v2259_v63 = vpop.eup %2258  ;;  %v1727_v19 = vsub.f32 0.0, %v1525_v45  ;;  %v1637_v17 = vsel %vm1635_vm10, %v1636_v34, %v1634_v59 }
 0x12f   :  { %v1529_v36 = vsel %vm1528_vm7, %v3892_v12, %v1527_v54  ;;  %v1422_v55 = vmul.f32 %v2257_v27, %v3927_v58  ;;  %v4007_v15 = vpop.xlane.xlu0 %1225  ;;  %v1639_v60 = vmul.f32 %v2259_v63, %v3919_v44  ;;  %vm1542_vm4 = vcmp.eq.f32.partialorder %v3963_v2, inf  ;;  %v2261_v18 = vpop.eup %2260 }
 0x130   :  { %v1934_v37 = vrot.slane %v1712_v11, %v2390_v28  ;;  %v1532_v8 = vsel %vm1530_vm1, %v1531_v1, %v1529_v36  ;;  %v4014_v22 = vpop.xlane.xlu1 %1132  ;;  %v1743_v10 = vsub.f32 0.0, %v1637_v17  ;;  %vm1544_vm6 = vcmp.eq.f32.partialorder %v3963_v2, 0.0 }
 0x131   :  { %v1728_v50 = vsub.f32 0.0, %v1532_v8  ;;  %v1424_v51 = vsel %vm1423_vm11, %v3927_v58, %v1422_v55  ;;  %2268 = vrsqrt.f32 %v4014_v22  ;;  %v1641_v16 = vsel %vm1640_vm13, %v3919_v44, %v1639_v60 }
 0x132   :  { %v2263_v53 = vpop.eup %2262  ;;  %v1935_v30 = vsel %vm1826_vm5, %v1934_v37, %v1930_v9  ;;  %v1427_v12 = vsel %vm1425_vm9, %v1426_v14, %v1424_v51  ;;  %v2002_v41 = vrot.slane %v1727_v19, %v2376_v21  ;;  %vm4307_vm8 = vcmask 1044484  }
 0x133   :  { %v2124_v61 = vsel %vm4307_vm8, %v1935_v30, %v3912_v48  ;;  %v2006_v62 = vrot.slane %v1728_v50, %v2390_v28  ;;  %v1644_v5 = vsel %vm1642_vm14, %v1643_v40, %v1641_v16  ;;  %v1534_v58 = vmul.f32 %v2263_v53, %v3953_v32  ;;  %vm4308_vm10 = vmmov %vm4307_vm8 }
 0x134   :  { %v2265_v7 = vpop.eup %2264  ;;  %v1744_v42 = vsub.f32 0.0, %v1644_v5  ;;  %v1429_v0 = vmul.f32 %v2261_v18, %v3936_v47  ;;  %v1545_v57 = vand.u32 2147483648, %v3963_v2  ;;  %v2074_v3 = vrot.slane %v1743_v10, %v2376_v21  ;;  %v4039_v34 = vpop.xlane.xlu0 %1135  ;;  %vm4309_vm7 = vmmov %vm4307_vm8 }
 0x135   :  { %v2007_v33 = vsel %vm1826_vm5, %v2006_v62, %v2002_v41  ;;  %v1713_v52 = vsub.f32 0.0, %v1427_v12  ;;  %v1541_v48 = vmul.f32 %v2265_v7, %v3963_v2  ;;  %v1536_v20 = vsel %vm1535_vm15, %v3953_v32, %v1534_v58  ;;  %v4058_v43 = vpop.xlane.xlu1 %1180 }
 0x136   :  { %v2131_v44 = vsel %vm4308_vm10, %v2007_v33, %v3924_v24  ;;  %v2078_v26 = vrot.slane %v1744_v42, %v2390_v28  ;;  %v1431_v1 = vsel %vm1430_vm0, %v3936_v47, %v1429_v0  ;;  %v1539_v23 = vsel %vm1537_vm3, %v1538_v29, %v1536_v20 }
 0x137   :  { %v2267_v4 = vpop.eup %2266  ;;  %v1434_v14 = vsel %vm1432_vm2, %v1433_v38, %v1431_v1  ;;  %v1543_v24 = vsel %vm1542_vm4, %v3963_v2, %v1541_v48  ;;  %2270 = vrsqrt.f32 %v4007_v15  ;;  %v1729_v40 = vsub.f32 0.0, %v1539_v23 }
 0x138   :  { %v2079_v9 = vsel %vm1826_vm5, %v2078_v26, %v2074_v3  ;;  %v1714_v13 = vsub.f32 0.0, %v1434_v14  ;;  %v1646_v45 = vmul.f32 %v2267_v4, %v3981_v39  ;;  %vm1647_vm1 = vcmp.eq.f32.partialorder %v3981_v39, inf }
 0x139   :  { %v4064_v32 = vsel %vm4309_vm7, %v2079_v9, %v3944_v31  ;;  %v1650_v47 = vand.u32 2147483648, %v3981_v39  ;;  %v1546_v25 = vsel %vm1544_vm6, %v1545_v57, %v1543_v24  ;;  %v1939_v35 = vrot.slane %v1713_v52, %v2376_v21 }
 0x13a   :  { %v1943_v56 = vrot.slane %v1714_v13, %v2390_v28  ;;  %v1648_v54 = vsel %vm1647_vm1, %v3981_v39, %v1646_v45  ;;  %v1730_v29 = vsub.f32 0.0, %v1546_v25  ;;  %v2011_v11 = vrot.slane %v1729_v40, %v2376_v21  ;;  %v4076_v31 = vpop.xlane.xlu0 %1183 }
 0x13b   :  { %v2269_v27 = vpop.eup %2268  ;;  %vm1649_vm11 = vcmp.eq.f32.partialorder %v3981_v39, 0.0  ;;  %2272 = vrsqrt.f32 %v4058_v43  ;;  %vm1437_vm9 = vcmp.eq.f32.partialorder %v4014_v22, inf  ;;  %v1440_v55 = vand.u32 2147483648, %v4014_v22 }
 0x13c   :  { %v1944_v59 = vsel %vm1826_vm5, %v1943_v56, %v1939_v35  ;;  %v1651_v2 = vsel %vm1649_vm11, %v1650_v47, %v1648_v54  ;;  %v2015_v38 = vrot.slane %v1730_v29, %v2390_v28  ;;  %v1436_v63 = vmul.f32 %v2269_v27, %v4014_v22 }
 0x13d   :  { %v4082_v19 = vsel %vm2115_vm12, %v1944_v59, %v2124_v61  ;;  %2274 = vrsqrt.f32 %v4039_v34  ;;  %v4086_v17 = vpop.xlane.xlu1 %1228  ;;  %v1745_v37 = vsub.f32 0.0, %v1651_v2  ;;  %vm1439_vm13 = vcmp.eq.f32.partialorder %v4014_v22, 0.0 }
 0x13e   :  { %v2016_v39 = vsel %vm1826_vm5, %v2015_v38, %v2011_v11  ;;  %v1438_v36 = vsel %vm1437_vm9, %v4014_v22, %v1436_v63  ;;  %vm2117_vm14 = vcmask 1046534   ;;  %vm1654_vm15 = vcmp.eq.f32.partialorder %v4007_v15, inf }
 0x13f   :  { %v4092_v8 = vsel %vm2115_vm12, %v2016_v39, %v2131_v44  ;;  %v1441_v60 = vsel %vm1439_vm13, %v1440_v55, %v1438_v36  ;;  %2276 = vrsqrt.f32 %v4086_v17  ;;  %vm1656_vm0 = vcmp.eq.f32.partialorder %v4007_v15, 0.0 }
 0x140   :  { %v1657_v10 = vand.u32 2147483648, %v4007_v15  ;;  %vm1549_vm3 = vcmp.eq.f32.partialorder %v4058_v43, inf  ;;  %2278 = vrsqrt.f32 %v4076_v31  ;;  %v4103_v51 = vpop.xlane.xlu0 %1231  ;;  %vm1551_vm2 = vcmp.eq.f32.partialorder %v4058_v43, 0.0 }
 0x141   :  { %v2271_v18 = vpop.eup %2270  ;;  %v4101_v50 = vpop.xlane.xlu1 %1093  ;;  %v1552_v53 = vand.u32 2147483648, %v4058_v43  ;;  %v4111_v30 = vsel %vm2117_vm14, %v3554_v46, %v3986_v49  ;;  %v2083_v12 = vrot.slane %v1745_v37, %v2376_v21  ;;  %v1715_v16 = vsub.f32 0.0, %v1441_v60 }
 0x142   :  { %v1653_v22 = vmul.f32 %v2271_v18, %v4007_v15  ;;  %vm1444_vm4 = vcmp.eq.f32.partialorder %v4039_v34, inf  ;;  %2280 = vrsqrt.f32 %v4101_v50  ;;  %vm1446_vm6 = vcmp.eq.f32.partialorder %v4039_v34, 0.0 }
 0x143   :  { %v1447_v61 = vand.u32 2147483648, %v4039_v34  ;;  %2282 = vrsqrt.f32 %v4103_v51  ;;  %vm1661_vm8 = vcmp.eq.f32.partialorder %v4086_v17, inf  ;;  %vm1663_vm10 = vcmp.eq.f32.partialorder %v4086_v17, 0.0 }
 0x144   :  { %v1655_v41 = vsel %vm1654_vm15, %v4007_v15, %v1653_v22  ;;  %v1664_v49 = vand.u32 2147483648, %v4086_v17  ;;  %vm1556_vm7 = vcmp.eq.f32.partialorder %v4076_v31, inf  ;;  %vm1558_vm1 = vcmp.eq.f32.partialorder %v4076_v31, 0.0 }
 0x145   :  { %v2273_v62 = vpop.eup %2272  ;;  %v1658_v46 = vsel %vm1656_vm0, %v1657_v10, %v1655_v41  ;;  %v1948_v0 = vrot.slane %v1715_v16, %v2376_v21  ;;  %v1559_v15 = vand.u32 2147483648, %v4076_v31  ;;  %vm1346_vm11 = vcmp.eq.f32.partialorder %v4101_v50, inf }
 0x146   :  { %v1746_v5 = vsub.f32 0.0, %v1658_v46  ;;  %v1548_v7 = vmul.f32 %v2273_v62, %v4058_v43  ;;  %v4130_v42 = vpop.xlane.xlu1 %1141  ;;  %vm1348_vm9 = vcmp.eq.f32.partialorder %v4101_v50, 0.0  ;;  %v1349_v44 = vand.u32 2147483648, %v4101_v50 }
 0x147   :  { %v2275_v58 = vpop.eup %2274  ;;  %2284 = vrsqrt.f32 %v4130_v42  ;;  %v4136_v57 = vpop.xlane.xlu0 %1138  ;;  %vm1668_vm13 = vcmp.eq.f32.partialorder %v4103_v51, inf  ;;  %vm1670_vm15 = vcmp.eq.f32.partialorder %v4103_v51, 0.0  ;;  %v1671_v23 = vand.u32 2147483648, %v4103_v51 }
 0x148   :  { %v2087_v3 = vrot.slane %v1746_v5, %v2390_v28  ;;  %v1550_v33 = vsel %vm1549_vm3, %v4058_v43, %v1548_v7  ;;  %v1443_v52 = vmul.f32 %v2275_v58, %v4039_v34  ;;  %2286 = vrsqrt.f32 %v4136_v57 }
 0x149   :  { %v1553_v48 = vsel %vm1551_vm2, %v1552_v53, %v1550_v33  ;;  %v2277_v26 = vpop.eup %2276  ;;  %vm1458_vm0 = vcmp.eq.f32.partialorder %v4130_v42, inf  ;;  %vm2119_vm3 = vcmask 1047559   ;;  %vm1460_vm2 = vcmp.eq.f32.partialorder %v4130_v42, 0.0 }
 0x14a   :  { %v2088_v20 = vsel %vm1826_vm5, %v2087_v3, %v2083_v12  ;;  %v1731_v1 = vsub.f32 0.0, %v1553_v48  ;;  %v1445_v4 = vsel %vm1444_vm4, %v4039_v34, %v1443_v52  ;;  %v4155_v14 = vpop.xlane.xlu1 %1189  ;;  %v2279_v24 = vpop.eup %2278  ;;  %v1660_v40 = vmul.f32 %v2277_v26, %v4086_v17 }
 0x14b   :  { %v4159_v43 = vsel %vm2115_vm12, %v2088_v20, %v4064_v32  ;;  %v1448_v9 = vsel %vm1446_vm6, %v1447_v61, %v1445_v4  ;;  %2288 = vrsqrt.f32 %v4155_v14  ;;  %v1555_v45 = vmul.f32 %v2279_v24, %v4076_v31 }
 0x14c   :  { %v1716_v13 = vsub.f32 0.0, %v1448_v9  ;;  %v1461_v47 = vand.u32 2147483648, %v4130_v42  ;;  %vm1451_vm12 = vcmp.eq.f32.partialorder %v4136_v57, inf  ;;  %v4170_v32 = vpop.xlane.xlu0 %1186  ;;  %v2281_v34 = vpop.eup %2280  ;;  %v1662_v25 = vsel %vm1661_vm8, %v4086_v17, %v1660_v40 }
 0x14d   :  { %vm2146_vm4 = vcmask 130048   ;;  %vm1453_vm6 = vcmp.eq.f32.partialorder %v4136_v57, 0.0  ;;  %v1454_v35 = vand.u32 2147483648, %v4136_v57  ;;  %2290 = vrsqrt.f32 %v4170_v32  ;;  %v2283_v56 = vpop.eup %2282 }
 0x14e   :  { %v1952_v54 = vrot.slane %v1716_v13, %v2390_v28  ;;  %v1665_v29 = vsel %vm1663_vm10, %v1664_v49, %v1662_v25  ;;  %v1557_v27 = vsel %vm1556_vm7, %v4076_v31, %v1555_v45  ;;  %v1345_v11 = vmul.f32 %v2281_v34, %v4101_v50 }
 0x14f   :  { %v2020_v59 = vrot.slane %v1731_v1, %v2376_v21  ;;  %v1560_v2 = vsel %vm1558_vm1, %v1559_v15, %v1557_v27  ;;  %v1667_v38 = vmul.f32 %v2283_v56, %v4103_v51  ;;  %vm1570_vm8 = vcmp.eq.f32.partialorder %v4155_v14, inf  ;;  %v4194_v55 = vpop.xlane.xlu1 %1237 }
 0x150   :  { %v1953_v63 = vsel %vm1826_vm5, %v1952_v54, %v1948_v0  ;;  %v1747_v39 = vsub.f32 0.0, %v1665_v29  ;;  %v1732_v17 = vsub.f32 0.0, %v1560_v2  ;;  %v1347_v36 = vsel %vm1346_vm11, %v4101_v50, %v1345_v11 }
 0x151   :  { %v2285_v37 = vpop.eup %2284  ;;  %v2126_v60 = vsel %vm2117_vm14, %v1953_v63, %v4082_v19  ;;  %v1350_v31 = vsel %vm1348_vm9, %v1349_v44, %v1347_v36  ;;  %v1669_v18 = vsel %vm1668_vm13, %v4103_v51, %v1667_v38  ;;  %vm1572_vm10 = vcmp.eq.f32.partialorder %v4155_v14, 0.0  ;;  %v1235_v48 = vpop.xlane.xlu0 %1234 }
 0x152   :  { %v2287_v10 = vpop.eup %2286  ;;  %v2024_v22 = vrot.slane %v1732_v17, %v2390_v28  ;;  %v1702_v53 = vsub.f32 0.0, %v1350_v31  ;;  %v1672_v12 = vsel %vm1670_vm15, %v1671_v23, %v1669_v18  ;;  %v1457_v16 = vmul.f32 %v2285_v37, %v4130_v42 }
 0x153   :  { %v1748_v41 = vsub.f32 0.0, %v1672_v12  ;;  %v1450_v19 = vmul.f32 %v2287_v10, %v4136_v57  ;;  %v1573_v50 = vand.u32 2147483648, %v4155_v14  ;;  %2292 = vrsqrt.f32 %v4194_v55 }
 0x154   :  { %v2092_v61 = vrot.slane %v1747_v39, %v2376_v21  ;;  %v2025_v62 = vsel %vm1826_vm5, %v2024_v22, %v2020_v59  ;;  %v1889_v46 = vrot.slane %v1702_v53, %v2390_v28  ;;  %v1459_v51 = vsel %vm1458_vm0, %v4130_v42, %v1457_v16 }
 0x155   :  { %v2289_v49 = vpop.eup %2288  ;;  %v2133_v5 = vsel %vm2117_vm14, %v2025_v62, %v4092_v8  ;;  %v2096_v7 = vrot.slane %v1748_v41, %v2390_v28  ;;  %v1462_v58 = vsel %vm1460_vm2, %v1461_v47, %v1459_v51  ;;  %v1452_v0 = vsel %vm1451_vm12, %v4136_v57, %v1450_v19 }
 0x156   :  { %v1890_v15 = vsel %vm1826_vm5, %v1889_v46, %v3638_v6  ;;  %v1718_v3 = vsub.f32 0.0, %v1462_v58  ;;  %v1455_v33 = vsel %vm1453_vm6, %v1454_v35, %v1452_v0  ;;  %v1569_v52 = vmul.f32 %v2289_v49, %v4155_v14 }
 0x157   :  { %v2291_v8 = vpop.eup %2290  ;;  %v2120_v44 = vsel %vm2119_vm3, %v1890_v15, %v4111_v30  ;;  %v2097_v42 = vsel %vm1826_vm5, %v2096_v7, %v2092_v61  ;;  %v1717_v26 = vsub.f32 0.0, %v1455_v33  ;;  %vm1563_vm7 = vcmp.eq.f32.partialorder %v4170_v32, inf }
 0x158   :  { %2147 = vst.msk [vmem:[%s4281_s3] sm:$0xff] %vm2146_vm4, %v2120_v44  ;;  %v1961_v6 = vrot.slane %v1718_v3, %v2390_v28  ;;  %v1571_v57 = vsel %vm1570_vm8, %v4155_v14, %v1569_v52  ;;  %v1562_v20 = vmul.f32 %v2291_v8, %v4170_v32  ;;  %v1566_v30 = vand.u32 2147483648, %v4170_v32 }
 0x159   :  { %v1957_v1 = vrot.slane %v1717_v26, %v2376_v21  ;;  %v1574_v4 = vsel %vm1572_vm10, %v1573_v50, %v1571_v57  ;;  %v2140_v23 = vsel %vm2117_vm14, %v2097_v42, %v4159_v43  ;;  %2294 = vrsqrt.f32 %v1235_v48 }
 0x15a   :  { %v1734_v24 = vsub.f32 0.0, %v1574_v4  ;;  %v1564_v9 = vsel %vm1563_vm7, %v4170_v32, %v1562_v20  ;;  %vm1565_vm1 = vcmp.eq.f32.partialorder %v4170_v32, 0.0  ;;  %vm1682_vm14 = vcmp.eq.f32.partialorder %v4194_v55, inf }
 0x15b   :  { %v1962_v40 = vsel %vm1826_vm5, %v1961_v6, %v1957_v1  ;;  %v1567_v13 = vsel %vm1565_vm1, %v1566_v30, %v1564_v9  ;;  %v1685_v32 = vand.u32 2147483648, %v4194_v55  ;;  %vm1684_vm11 = vcmp.eq.f32.partialorder %v4194_v55, 0.0 }
 0x15c   :  { %v2127_v45 = vsel %vm2119_vm3, %v1962_v40, %v2126_v60  ;;  %v2033_v47 = vrot.slane %v1734_v24, %v2390_v28  ;;  %v1733_v34 = vsub.f32 0.0, %v1567_v13  ;;  %vm1675_vm9 = vcmp.eq.f32.partialorder %v1235_v48, inf }
 0x15d   :  { %v2293_v25 = vpop.eup %2292  ;;  %2148 = vst.msk [vmem:[%s4281_s3 + $0x8] sm:$0xff] %vm2146_vm4, %v2127_v45  ;;  %v1678_v2 = vand.u32 2147483648, %v1235_v48  ;;  %vm1677_vm13 = vcmp.eq.f32.partialorder %v1235_v48, 0.0 }
 0x15e   :  { %v2029_v14 = vrot.slane %v1733_v34, %v2376_v21  ;;  %v1681_v43 = vmul.f32 %v2293_v25, %v4194_v55 }
 0x160   :  { %v2034_v35 = vsel %vm1826_vm5, %v2033_v47, %v2029_v14  ;;  %v1683_v56 = vsel %vm1682_vm14, %v4194_v55, %v1681_v43 }
 0x161   :  { %v2134_v54 = vsel %vm2119_vm3, %v2034_v35, %v2133_v5  ;;  %v1686_v29 = vsel %vm1684_vm11, %v1685_v32, %v1683_v56 }
 0x162   :  { %2149 = vst.msk [vmem:[%s4281_s3 + $0x10] sm:$0xff] %vm2146_vm4, %v2134_v54  ;;  %v1750_v11 = vsub.f32 0.0, %v1686_v29 }
 0x163   :  { %v2295_v27 = vpop.eup %2294 }
 0x164   :  { %v1674_v59 = vmul.f32 %v2295_v27, %v1235_v48  ;;  %v2105_v39 = vrot.slane %v1750_v11, %v2390_v28 }
 0x166   :  { %v1676_v38 = vsel %vm1675_vm9, %v1235_v48, %v1674_v59 }
 0x167   :  { %v1679_v63 = vsel %vm1677_vm13, %v1678_v2, %v1676_v38 }
 0x168   :  { %v1749_v17 = vsub.f32 0.0, %v1679_v63 }
 0x16a   :  { %v2101_v36 = vrot.slane %v1749_v17, %v2376_v21 }
 0x16c   :  { %v2106_v55 = vsel %vm1826_vm5, %v2105_v39, %v2101_v36 }
 0x16d   :  { %v2141_v37 = vsel %vm2119_vm3, %v2106_v55, %v2140_v23 }
 0x16e   :  { %2150 = vst.msk [vmem:[%s4281_s3 + $0x18] sm:$0xff] %vm2146_vm4, %v2141_v37 }

</bundles_post_ra>
